<compile_context>
chip_gen: v6e
topology: v6e:2x2x1
jax: 0.10.0
libtpu: 0.0.40
codegen_flags: <defaults>
</compile_context>

<pallas_src>
import jax
import jax.numpy as jnp
from jax.experimental import pallas as pl
from jax.experimental.pallas import tpu as pltpu


def mlp_kernel(x_ref, w_ref, b_ref, o_ref):
    # o_tile = x_tile @ W_eff + b_eff
    #   x_ref : (tb, 8)  batch tile, streamed (native PyTorch row-major layout)
    #   w_ref : (8, 4)   folded weight, resident across all grid steps
    #   b_ref : (1, 4)   folded bias, broadcast over the batch (sublane) axis
    #   o_ref : (tb, 4)  batch tile of the output
    o_ref[...] = (
        jnp.dot(x_ref[...], w_ref[...], preferred_element_type=jnp.float32)
        + b_ref[...]
    ).astype(o_ref.dtype)


def mlp_forward(x, w0, b0, w1, b1, *, tb=None, min_pallas_batch=4096):
    """x: (B, 8) f32.  Weights stored transposed (in, out): w0 (8,8), w1 (8,4);
    biases b0 (1,8), b1 (1,4).  Returns (B, 4) f32 == fc1(fc0(x))."""
    B = x.shape[0]

    # Fold the two affine layers (valid: MLPModel has no activation between them).
    w_eff = w0 @ w1            # (8, 4)
    b_eff = b0 @ w1 + b1       # (1, 4)

    # Small batch: fused XLA x @ W + b is already at the HBM roofline; the Pallas
    # dispatch/pipeline only pays off once per-step DMA dwarfs fixed overheads.
    if B < min_pallas_batch:
        return x @ w_eff + b_eff

    if tb is None:
        # >= 8 grid steps when possible (keeps both v7x TensorCores busy and hides
        # the pipeline prologue), >= 1024 rows/step to amortize the ~0.35 us fixed
        # per-step cost, <= 8192 rows/step to bound the lane-padded VMEM footprint.
        tb = min(8192, max(1024, pl.cdiv(B, 8)))
    tb = max(8, (tb + 7) // 8 * 8)      # sublane multiple of 8
    n_blocks = pl.cdiv(B, tb)           # ragged last block: Pallas masks OOB writes

    # Double-buffered in+out tiles, lane-padded 8/4 -> 128 lanes, plus slack.
    vmem_limit = 2 * (tb * 128 * 4) * 2 + (4 << 20)

    out = pl.pallas_call(
        mlp_kernel,
        out_shape=jax.ShapeDtypeStruct((B, 4), x.dtype),
        grid=(n_blocks,),
        in_specs=[
            pl.BlockSpec((tb, 8), lambda i: (i, 0)),   # x batch tile (streamed)
            pl.BlockSpec((8, 4), lambda i: (0, 0)),    # folded weight (resident)
            pl.BlockSpec((1, 4), lambda i: (0, 0)),    # folded bias (resident)
        ],
        out_specs=pl.BlockSpec((tb, 4), lambda i: (i, 0)),
        compiler_params=pltpu.CompilerParams(
            dimension_semantics=("parallel",),
            vmem_limit_bytes=vmem_limit,
        ),
    )(x, w_eff, b_eff)

    return out


def init_params(key):
    """Deterministic init mimicking nn.Linear's default U(-1/sqrt(fan_in), 1/sqrt(fan_in)).
    Weights are stored transposed, i.e. (in_features, out_features)."""
    k0w, k0b, k1w, k1b = jax.random.split(key, 4)
    bound0 = 1.0 / jnp.sqrt(8.0)
    bound1 = 1.0 / jnp.sqrt(8.0)
    w0 = jax.random.uniform(k0w, (8, 8), jnp.float32, -bound0, bound0)   # fc0: in=8, out=8
    b0 = jax.random.uniform(k0b, (1, 8), jnp.float32, -bound0, bound0)
    w1 = jax.random.uniform(k1w, (8, 4), jnp.float32, -bound1, bound1)   # fc1: in=8, out=4
    b1 = jax.random.uniform(k1b, (1, 4), jnp.float32, -bound1, bound1)
    return w0, b0, w1, b1


if __name__ == "__main__":
    key = jax.random.PRNGKey(0)
    kx, kp = jax.random.split(key)
    w0, b0, w1, b1 = init_params(kp)

    def ref_fwd(x):
        # Exact two-layer math of the PyTorch module.
        return (x @ w0 + b0) @ w1 + b1

    # Pallas path: 8 grid steps of 2048 rows, no host-side transpose/pad/slice.
    x = jax.random.normal(kx, (16384, 8), jnp.float32)
    out = mlp_forward(x, w0, b0, w1, b1)
    jax.block_until_ready(out)
    assert out.shape == (16384, 4)
    assert jnp.allclose(out, ref_fwd(x), atol=1e-5, rtol=1e-5)

    # Ragged batch: exercises the masked final block (no pad copy, no output slice).
    x_odd = jax.random.normal(kx, (10000, 8), jnp.float32)
    out_odd = mlp_forward(x_odd, w0, b0, w1, b1)
    jax.block_until_ready(out_odd)
    assert out_odd.shape == (10000, 4)
    assert jnp.allclose(out_odd, ref_fwd(x_odd), atol=1e-5, rtol=1e-5)

    # Tiny batch (like the original B=2 demo): fused-XLA fallback path.
    x_small = jax.random.normal(kx, (2, 8), jnp.float32)
    out_small = mlp_forward(x_small, w0, b0, w1, b1)
    jax.block_until_ready(out_small)
    assert jnp.allclose(out_small, ref_fwd(x_small), atol=1e-5, rtol=1e-5)

    print("KERNEL_OK")
</pallas_src>

<mosaic_0001>
module attributes {stable_mosaic.version = 11 : i64} {
  func.func @mlp_kernel(%arg0: i32, %arg1: memref<2048x8xf32, #tpu.memory_space<vmem>>, %arg2: memref<8x4xf32, #tpu.memory_space<vmem>>, %arg3: memref<1x4xf32, #tpu.memory_space<vmem>>, %arg4: memref<2048x4xf32, #tpu.memory_space<vmem>>) attributes {dimension_semantics = [#tpu.dimension_semantics<parallel>], iteration_bounds = array<i64: 8>, scalar_prefetch = 0 : i64, scratch_operands = 0 : i64, tpu.core_type = #tpu.core_type<tc>, window_params = [{transform_indices = @transform_0, window_bounds = array<i64: 2048, 8>}, {pipeline_mode = #tpu.pipeline_mode<synchronous>, transform_indices = @transform_1, window_bounds = array<i64: 8, 4>}, {pipeline_mode = #tpu.pipeline_mode<synchronous>, transform_indices = @transform_2, window_bounds = array<i64: 1, 4>}, {transform_indices = @transform_3, window_bounds = array<i64: 2048, 4>}]} {
    %c0 = arith.constant 0 : index
    %c0_0 = arith.constant 0 : index
    %0 = vector.load %arg1[%c0, %c0_0] : memref<2048x8xf32, #tpu.memory_space<vmem>>, vector<2048x8xf32>
    %c0_1 = arith.constant 0 : index
    %c0_2 = arith.constant 0 : index
    %1 = vector.load %arg2[%c0_1, %c0_2] : memref<8x4xf32, #tpu.memory_space<vmem>>, vector<8x4xf32>
    %cst = arith.constant dense<0.000000e+00> : vector<2048x4xf32>
    %2 = tpu.matmul %0, %1, %cst {dimension_numbers = #tpu.dot_dimension_numbers<[1], [0], [0], [1], [0, 0, 1, 1], [], []>} : vector<2048x8xf32>, vector<8x4xf32>, vector<2048x4xf32> -> vector<2048x4xf32>
    %c0_3 = arith.constant 0 : index
    %c0_4 = arith.constant 0 : index
    %3 = vector.load %arg3[%c0_3, %c0_4] : memref<1x4xf32, #tpu.memory_space<vmem>>, vector<1x4xf32>
    %4 = vector.broadcast %3 : vector<1x4xf32> to vector<2048x4xf32>
    %5 = arith.addf %2, %4 : vector<2048x4xf32>
    %c0_5 = arith.constant 0 : index
    %c0_6 = arith.constant 0 : index
    %6 = vector.load %arg4[%c0_5, %c0_6] : memref<2048x4xf32, #tpu.memory_space<vmem>>, vector<2048x4xf32>
    tpu.vector_store %arg4[%c0_5, %c0_6], %5 {strides = array<i32>} : memref<2048x4xf32, #tpu.memory_space<vmem>>, vector<2048x4xf32>,
    return
  }
  func.func @transform_0(%arg0: i32) -> (i32, i32) {
    %c0_i32 = arith.constant 0 : i32
    %c0_i32_0 = arith.constant 0 : i32
    return %arg0, %c0_i32 : i32, i32
  }
  func.func @transform_1(%arg0: i32) -> (i32, i32) {
    %c0_i32 = arith.constant 0 : i32
    %c0_i32_0 = arith.constant 0 : i32
    %c0_i32_1 = arith.constant 0 : i32
    return %c0_i32, %c0_i32_0 : i32, i32
  }
  func.func @transform_2(%arg0: i32) -> (i32, i32) {
    %c0_i32 = arith.constant 0 : i32
    %c0_i32_0 = arith.constant 0 : i32
    %c0_i32_1 = arith.constant 0 : i32
    return %c0_i32, %c0_i32_0 : i32, i32
  }
  func.func @transform_3(%arg0: i32) -> (i32, i32) {
    %c0_i32 = arith.constant 0 : i32
    %c0_i32_0 = arith.constant 0 : i32
    return %arg0, %c0_i32 : i32, i32
  }
}

</mosaic_0001>

<bundles_post_ra>
// kernel: tpu_custom_call.1
= control target key start
LH: loop header
LB: loop body
LE: loop exit
PB: predicated region body
PF: predicated region fallthrough
CT: control target
= control target key end

     0   :  { %s3815_s12 = smov 0   ;;  %s5136_s0 = inlined_call_operand.vmem [shape: f32[16384,8], index: 0, kind: input, shape index: {}]   ;;  %s5137_s1 = inlined_call_operand.vmem [shape: f32[8,4], index: 1, kind: input, shape index: {}]   ;;  %s5138_s2 = inlined_call_operand.vmem [shape: f32[1,4], index: 2, kind: input, shape index: {}]   ;;  %s5139_s3 = inlined_call_operand.vmem [shape: f32[16384,4], index: 3, kind: output, shape index: {}]  }
   0x1 LB: > { %s2865_s13 = sadd.s32 4294967295, %s3793_s12   ;;  %p2869_p0 = scmp.ge.s32.totalorder %s3793_s12, 1  ;;  %s3793_s12 = sphi %s3815_s12, %s13_s12  }
   0x2   : > { %p138_p1 = scmp.lt.s32.totalorder %s3793_s12, 9 }
   0x4   : > { %p139_p2 = pnand %p2869_p0, %p138_p1 }
   0x5   : > { %s2870_s16 = sshll.u32 (!%p139_p2), %s2865_s13, 8 }
   0x6   : > { %142 = sbr.rel (%p139_p2) target bundleno = 467 (0x1d3), region = 32  ;;  %p163_p3 = scmp.lt.s32.totalorder (!%p139_p2), %s2870_s16, 2047 }
   0xb   : > { %v430_v0 = vld [vmem:[%s5137_s1] sm:$0xff]  ;;  %s5141_s16 = smov (!%p163_p3, %s2870_s16), 2047  ;;  %vm438_vm0 = vcmask 64512   ;;  %vm2552_vm1 = vcmask 31744  }
   0xc   : > { %3390 = vmatprep.subr.mxu0 %v430_v0  ;;  %3776 = vmatprep.subr.mxu1 %v430_v0  ;;  %s2871_s17 = sshll.u32 %s5141_s16, 3 }
   0xd   : > { %3391 = vmatpush3.msra.mxu0 %v430_v0  ;;  %3777 = vmatpush3.msra.mxu1 %v430_v0  ;;  %s3834_s20 = scalar_lea.vmem %s5136_s0, %s2871_s17  ;;  %s4238_s25 = scalar_lea.vmem %s5139_s3, %s2871_s17 }
   0xe   : > { %v174_v1 = vld [vmem:[%s3834_s20] sm:$0xff]  ;;  %v175_v3 = vld [vmem:[%s3834_s20 + $0x8] sm:$0xff]  ;;  %v176_v5 = vld [vmem:[%s3834_s20 + $0x10] sm:$0xff] }
   0xf   : > { %v302_v2 = vld [vmem:[%s3834_s20 + $0x400] sm:$0xff]  ;;  %3392 = vmatprep.mubr.msk.f32.mxu0 %vm438_vm0, %v174_v1  ;;  %v303_v4 = vld [vmem:[%s3834_s20 + $0x408] sm:$0xff]  ;;  %v304_v6 = vld [vmem:[%s3834_s20 + $0x410] sm:$0xff] }
  0x10   : > { %3584 = vmatprep.mubr.msk.f32.mxu1 %vm438_vm0, %v302_v2  ;;  %3393 = vmatmul.mubr.msk.f32.vlgmr.msra.gmra.mxu0 %vm438_vm0, %v175_v3  ;;  %v177_v7 = vld [vmem:[%s3834_s20 + $0x18] sm:$0xff]  ;;  %v178_v9 = vld [vmem:[%s3834_s20 + $0x20] sm:$0xff]  ;;  %v179_v11 = vld [vmem:[%s3834_s20 + $0x28] sm:$0xff] }
  0x11   : > { %3585 = vmatmul.mubr.msk.f32.vlgmr.msra.gmra.mxu1 %vm438_vm0, %v303_v4  ;;  %3395 = vmatprep.mubr.msk.f32.mxu0 %vm438_vm0, %v176_v5  ;;  %v305_v8 = vld [vmem:[%s3834_s20 + $0x418] sm:$0xff]  ;;  %v306_v10 = vld [vmem:[%s3834_s20 + $0x420] sm:$0xff]  ;;  %v307_v12 = vld [vmem:[%s3834_s20 + $0x428] sm:$0xff] }
  0x12   : > { %3587 = vmatprep.mubr.msk.f32.mxu1 %vm438_vm0, %v304_v6  ;;  %v180_v13 = vld [vmem:[%s3834_s20 + $0x30] sm:$0xff]  ;;  %v181_v15 = vld [vmem:[%s3834_s20 + $0x38] sm:$0xff]  ;;  %v182_v17 = vld [vmem:[%s3834_s20 + $0x40] sm:$0xff] }
  0x13   : > { %v308_v14 = vld [vmem:[%s3834_s20 + $0x430] sm:$0xff]  ;;  %v309_v16 = vld [vmem:[%s3834_s20 + $0x438] sm:$0xff]  ;;  %v310_v18 = vld [vmem:[%s3834_s20 + $0x440] sm:$0xff] }
  0x14   : > { %3396 = vmatmul.mubr.msk.f32.gmra.mxu0 %vm438_vm0, %v177_v7  ;;  %v183_v19 = vld [vmem:[%s3834_s20 + $0x48] sm:$0xff]  ;;  %v184_v21 = vld [vmem:[%s3834_s20 + $0x50] sm:$0xff]  ;;  %v185_v23 = vld [vmem:[%s3834_s20 + $0x58] sm:$0xff] }
  0x15   : > { %3588 = vmatmul.mubr.msk.f32.gmra.mxu1 %vm438_vm0, %v305_v8  ;;  %3398 = vmatprep.mubr.msk.f32.mxu0 %vm438_vm0, %v178_v9  ;;  %v311_v20 = vld [vmem:[%s3834_s20 + $0x448] sm:$0xff]  ;;  %v312_v22 = vld [vmem:[%s3834_s20 + $0x450] sm:$0xff]  ;;  %v313_v24 = vld [vmem:[%s3834_s20 + $0x458] sm:$0xff] }
  0x16   : > { %3590 = vmatprep.mubr.msk.f32.mxu1 %vm438_vm0, %v306_v10  ;;  %v186_v25 = vld [vmem:[%s3834_s20 + $0x60] sm:$0xff]  ;;  %v187_v27 = vld [vmem:[%s3834_s20 + $0x68] sm:$0xff]  ;;  %v188_v29 = vld [vmem:[%s3834_s20 + $0x70] sm:$0xff] }
  0x17   : > { %v314_v26 = vld [vmem:[%s3834_s20 + $0x460] sm:$0xff]  ;;  %v315_v28 = vld [vmem:[%s3834_s20 + $0x468] sm:$0xff]  ;;  %v316_v30 = vld [vmem:[%s3834_s20 + $0x470] sm:$0xff] }
  0x18   : > { %3399 = vmatmul.mubr.msk.f32.gmra.mxu0 %vm438_vm0, %v179_v11  ;;  %v189_v31 = vld [vmem:[%s3834_s20 + $0x78] sm:$0xff]  ;;  %v190_v33 = vld [vmem:[%s3834_s20 + $0x80] sm:$0xff]  ;;  %v191_v35 = vld [vmem:[%s3834_s20 + $0x88] sm:$0xff] }
  0x19   : > { %3591 = vmatmul.mubr.msk.f32.gmra.mxu1 %vm438_vm0, %v307_v12  ;;  %3401 = vmatprep.mubr.msk.f32.mxu0 %vm438_vm0, %v180_v13  ;;  %v317_v32 = vld [vmem:[%s3834_s20 + $0x478] sm:$0xff]  ;;  %v318_v34 = vld [vmem:[%s3834_s20 + $0x480] sm:$0xff]  ;;  %v319_v36 = vld [vmem:[%s3834_s20 + $0x488] sm:$0xff] }
  0x1a   : > { %3593 = vmatprep.mubr.msk.f32.mxu1 %vm438_vm0, %v308_v14  ;;  %v192_v37 = vld [vmem:[%s3834_s20 + $0x90] sm:$0xff]  ;;  %v193_v39 = vld [vmem:[%s3834_s20 + $0x98] sm:$0xff]  ;;  %v194_v41 = vld [vmem:[%s3834_s20 + $0xa0] sm:$0xff] }
  0x1b   : > { %v320_v38 = vld [vmem:[%s3834_s20 + $0x490] sm:$0xff]  ;;  %v321_v40 = vld [vmem:[%s3834_s20 + $0x498] sm:$0xff]  ;;  %v322_v42 = vld [vmem:[%s3834_s20 + $0x4a0] sm:$0xff] }
  0x1c   : > { %3402 = vmatmul.mubr.msk.f32.gmra.mxu0 %vm438_vm0, %v181_v15  ;;  %v195_v43 = vld [vmem:[%s3834_s20 + $0xa8] sm:$0xff]  ;;  %v196_v45 = vld [vmem:[%s3834_s20 + $0xb0] sm:$0xff]  ;;  %v197_v47 = vld [vmem:[%s3834_s20 + $0xb8] sm:$0xff] }
  0x1d   : > { %3594 = vmatmul.mubr.msk.f32.gmra.mxu1 %vm438_vm0, %v309_v16  ;;  %3404 = vmatprep.mubr.msk.f32.mxu0 %vm438_vm0, %v182_v17  ;;  %v323_v44 = vld [vmem:[%s3834_s20 + $0x4a8] sm:$0xff]  ;;  %v324_v46 = vld [vmem:[%s3834_s20 + $0x4b0] sm:$0xff]  ;;  %v325_v48 = vld [vmem:[%s3834_s20 + $0x4b8] sm:$0xff] }
  0x1e   : > { %3596 = vmatprep.mubr.msk.f32.mxu1 %vm438_vm0, %v310_v18  ;;  %v198_v49 = vld [vmem:[%s3834_s20 + $0xc0] sm:$0xff]  ;;  %v199_v51 = vld [vmem:[%s3834_s20 + $0xc8] sm:$0xff]  ;;  %v200_v53 = vld [vmem:[%s3834_s20 + $0xd0] sm:$0xff] }
  0x1f   : > { %v326_v50 = vld [vmem:[%s3834_s20 + $0x4c0] sm:$0xff]  ;;  %v327_v52 = vld [vmem:[%s3834_s20 + $0x4c8] sm:$0xff]  ;;  %v328_v54 = vld [vmem:[%s3834_s20 + $0x4d0] sm:$0xff] }
  0x20   : > { %3405 = vmatmul.mubr.msk.f32.gmra.mxu0 %vm438_vm0, %v183_v19  ;;  %v201_v55 = vld [vmem:[%s3834_s20 + $0xd8] sm:$0xff]  ;;  %v202_v57 = vld [vmem:[%s3834_s20 + $0xe0] sm:$0xff]  ;;  %v203_v59 = vld [vmem:[%s3834_s20 + $0xe8] sm:$0xff] }
  0x21   : > { %3597 = vmatmul.mubr.msk.f32.gmra.mxu1 %vm438_vm0, %v311_v20  ;;  %3407 = vmatprep.mubr.msk.f32.mxu0 %vm438_vm0, %v184_v21  ;;  %v329_v56 = vld [vmem:[%s3834_s20 + $0x4d8] sm:$0xff]  ;;  %v330_v58 = vld [vmem:[%s3834_s20 + $0x4e0] sm:$0xff]  ;;  %v331_v60 = vld [vmem:[%s3834_s20 + $0x4e8] sm:$0xff] }
  0x22   : > { %3599 = vmatprep.mubr.msk.f32.mxu1 %vm438_vm0, %v312_v22  ;;  %v204_v61 = vld [vmem:[%s3834_s20 + $0xf0] sm:$0xff]  ;;  %v205_v63 = vld [vmem:[%s3834_s20 + $0xf8] sm:$0xff]  ;;  %v206_v1 = vld [vmem:[%s3834_s20 + $0x100] sm:$0xff] }
  0x23   : > { %v332_v62 = vld [vmem:[%s3834_s20 + $0x4f0] sm:$0xff]  ;;  %v333_v0 = vld [vmem:[%s3834_s20 + $0x4f8] sm:$0xff]  ;;  %v334_v2 = vld [vmem:[%s3834_s20 + $0x500] sm:$0xff] }
  0x24   : > { %3408 = vmatmul.mubr.msk.f32.gmra.mxu0 %vm438_vm0, %v185_v23  ;;  %v207_v3 = vld [vmem:[%s3834_s20 + $0x108] sm:$0xff]  ;;  %v208_v5 = vld [vmem:[%s3834_s20 + $0x110] sm:$0xff]  ;;  %v209_v7 = vld [vmem:[%s3834_s20 + $0x118] sm:$0xff] }
  0x25   : > { %3600 = vmatmul.mubr.msk.f32.gmra.mxu1 %vm438_vm0, %v313_v24  ;;  %3410 = vmatprep.mubr.msk.f32.mxu0 %vm438_vm0, %v186_v25  ;;  %v335_v4 = vld [vmem:[%s3834_s20 + $0x508] sm:$0xff]  ;;  %v336_v6 = vld [vmem:[%s3834_s20 + $0x510] sm:$0xff]  ;;  %v337_v8 = vld [vmem:[%s3834_s20 + $0x518] sm:$0xff] }
  0x26   : > { %3602 = vmatprep.mubr.msk.f32.mxu1 %vm438_vm0, %v314_v26  ;;  %v210_v9 = vld [vmem:[%s3834_s20 + $0x120] sm:$0xff]  ;;  %v211_v11 = vld [vmem:[%s3834_s20 + $0x128] sm:$0xff]  ;;  %v212_v13 = vld [vmem:[%s3834_s20 + $0x130] sm:$0xff] }
  0x27   : > { %v338_v10 = vld [vmem:[%s3834_s20 + $0x520] sm:$0xff]  ;;  %v339_v12 = vld [vmem:[%s3834_s20 + $0x528] sm:$0xff]  ;;  %v340_v14 = vld [vmem:[%s3834_s20 + $0x530] sm:$0xff] }
  0x28   : > { %3411 = vmatmul.mubr.msk.f32.gmra.mxu0 %vm438_vm0, %v187_v27  ;;  %v213_v15 = vld [vmem:[%s3834_s20 + $0x138] sm:$0xff]  ;;  %v214_v17 = vld [vmem:[%s3834_s20 + $0x140] sm:$0xff]  ;;  %v215_v19 = vld [vmem:[%s3834_s20 + $0x148] sm:$0xff] }
  0x29   : > { %3603 = vmatmul.mubr.msk.f32.gmra.mxu1 %vm438_vm0, %v315_v28  ;;  %3413 = vmatprep.mubr.msk.f32.mxu0 %vm438_vm0, %v188_v29  ;;  %v341_v16 = vld [vmem:[%s3834_s20 + $0x538] sm:$0xff]  ;;  %v342_v18 = vld [vmem:[%s3834_s20 + $0x540] sm:$0xff]  ;;  %v343_v20 = vld [vmem:[%s3834_s20 + $0x548] sm:$0xff] }
  0x2a   : > { %3605 = vmatprep.mubr.msk.f32.mxu1 %vm438_vm0, %v316_v30  ;;  %v216_v21 = vld [vmem:[%s3834_s20 + $0x150] sm:$0xff]  ;;  %v217_v23 = vld [vmem:[%s3834_s20 + $0x158] sm:$0xff]  ;;  %v218_v25 = vld [vmem:[%s3834_s20 + $0x160] sm:$0xff] }
  0x2b   : > { %v344_v22 = vld [vmem:[%s3834_s20 + $0x550] sm:$0xff]  ;;  %v345_v24 = vld [vmem:[%s3834_s20 + $0x558] sm:$0xff]  ;;  %v346_v26 = vld [vmem:[%s3834_s20 + $0x560] sm:$0xff] }
  0x2c   : > { %3414 = vmatmul.mubr.msk.f32.gmra.mxu0 %vm438_vm0, %v189_v31  ;;  %v219_v27 = vld [vmem:[%s3834_s20 + $0x168] sm:$0xff]  ;;  %v220_v29 = vld [vmem:[%s3834_s20 + $0x170] sm:$0xff]  ;;  %v221_v31 = vld [vmem:[%s3834_s20 + $0x178] sm:$0xff] }
  0x2d   : > { %3606 = vmatmul.mubr.msk.f32.gmra.mxu1 %vm438_vm0, %v317_v32  ;;  %3416 = vmatprep.mubr.msk.f32.mxu0 %vm438_vm0, %v190_v33  ;;  %v347_v28 = vld [vmem:[%s3834_s20 + $0x568] sm:$0xff]  ;;  %v348_v30 = vld [vmem:[%s3834_s20 + $0x570] sm:$0xff]  ;;  %v349_v32 = vld [vmem:[%s3834_s20 + $0x578] sm:$0xff] }
  0x2e   : > { %3608 = vmatprep.mubr.msk.f32.mxu1 %vm438_vm0, %v318_v34  ;;  %v222_v33 = vld [vmem:[%s3834_s20 + $0x180] sm:$0xff] }
  0x2f   : > { %v350_v34 = vld [vmem:[%s3834_s20 + $0x580] sm:$0xff] }
  0x30   : > { %3417 = vmatmul.mubr.msk.f32.gmra.mxu0 %vm438_vm0, %v191_v35  ;;  %v223_v35 = vld [vmem:[%s3834_s20 + $0x188] sm:$0xff] }
  0x31   : > { %3609 = vmatmul.mubr.msk.f32.gmra.mxu1 %vm438_vm0, %v319_v36  ;;  %3419 = vmatprep.mubr.msk.f32.mxu0 %vm438_vm0, %v192_v37  ;;  %v351_v36 = vld [vmem:[%s3834_s20 + $0x588] sm:$0xff]  ;;  %v224_v37 = vld [vmem:[%s3834_s20 + $0x190] sm:$0xff] }
  0x32   : > { %3611 = vmatprep.mubr.msk.f32.mxu1 %vm438_vm0, %v320_v38  ;;  %v352_v38 = vld [vmem:[%s3834_s20 + $0x590] sm:$0xff] }
  0x34   : > { %3420 = vmatmul.mubr.msk.f32.gmra.mxu0 %vm438_vm0, %v193_v39  ;;  %v225_v39 = vld [vmem:[%s3834_s20 + $0x198] sm:$0xff] }
  0x35   : > { %3612 = vmatmul.mubr.msk.f32.gmra.mxu1 %vm438_vm0, %v321_v40  ;;  %3422 = vmatprep.mubr.msk.f32.mxu0 %vm438_vm0, %v194_v41  ;;  %v353_v40 = vld [vmem:[%s3834_s20 + $0x598] sm:$0xff]  ;;  %v226_v41 = vld [vmem:[%s3834_s20 + $0x1a0] sm:$0xff] }
  0x36   : > { %3614 = vmatprep.mubr.msk.f32.mxu1 %vm438_vm0, %v322_v42  ;;  %v354_v42 = vld [vmem:[%s3834_s20 + $0x5a0] sm:$0xff] }
  0x38   : > { %3423 = vmatmul.mubr.msk.f32.gmra.mxu0 %vm438_vm0, %v195_v43  ;;  %v227_v43 = vld [vmem:[%s3834_s20 + $0x1a8] sm:$0xff] }
  0x39   : > { %3615 = vmatmul.mubr.msk.f32.gmra.mxu1 %vm438_vm0, %v323_v44  ;;  %3425 = vmatprep.mubr.msk.f32.mxu0 %vm438_vm0, %v196_v45  ;;  %v355_v44 = vld [vmem:[%s3834_s20 + $0x5a8] sm:$0xff]  ;;  %v228_v45 = vld [vmem:[%s3834_s20 + $0x1b0] sm:$0xff] }
  0x3a   : > { %3617 = vmatprep.mubr.msk.f32.mxu1 %vm438_vm0, %v324_v46  ;;  %v356_v46 = vld [vmem:[%s3834_s20 + $0x5b0] sm:$0xff] }
  0x3c   : > { %3426 = vmatmul.mubr.msk.f32.gmra.mxu0 %vm438_vm0, %v197_v47  ;;  %v229_v47 = vld [vmem:[%s3834_s20 + $0x1b8] sm:$0xff] }
  0x3d   : > { %3618 = vmatmul.mubr.msk.f32.gmra.mxu1 %vm438_vm0, %v325_v48  ;;  %3428 = vmatprep.mubr.msk.f32.mxu0 %vm438_vm0, %v198_v49  ;;  %v357_v48 = vld [vmem:[%s3834_s20 + $0x5b8] sm:$0xff]  ;;  %v230_v49 = vld [vmem:[%s3834_s20 + $0x1c0] sm:$0xff] }
  0x3e   : > { %3620 = vmatprep.mubr.msk.f32.mxu1 %vm438_vm0, %v326_v50  ;;  %v358_v50 = vld [vmem:[%s3834_s20 + $0x5c0] sm:$0xff] }
  0x40   : > { %3429 = vmatmul.mubr.msk.f32.gmra.mxu0 %vm438_vm0, %v199_v51  ;;  %v231_v51 = vld [vmem:[%s3834_s20 + $0x1c8] sm:$0xff] }
  0x41   : > { %3621 = vmatmul.mubr.msk.f32.gmra.mxu1 %vm438_vm0, %v327_v52  ;;  %3431 = vmatprep.mubr.msk.f32.mxu0 %vm438_vm0, %v200_v53  ;;  %v359_v52 = vld [vmem:[%s3834_s20 + $0x5c8] sm:$0xff]  ;;  %v232_v53 = vld [vmem:[%s3834_s20 + $0x1d0] sm:$0xff] }
  0x42   : > { %3623 = vmatprep.mubr.msk.f32.mxu1 %vm438_vm0, %v328_v54  ;;  %v360_v54 = vld [vmem:[%s3834_s20 + $0x5d0] sm:$0xff] }
  0x44   : > { %3432 = vmatmul.mubr.msk.f32.gmra.mxu0 %vm438_vm0, %v201_v55  ;;  %v233_v55 = vld [vmem:[%s3834_s20 + $0x1d8] sm:$0xff] }
  0x45   : > { %3624 = vmatmul.mubr.msk.f32.gmra.mxu1 %vm438_vm0, %v329_v56  ;;  %3434 = vmatprep.mubr.msk.f32.mxu0 %vm438_vm0, %v202_v57  ;;  %v361_v56 = vld [vmem:[%s3834_s20 + $0x5d8] sm:$0xff]  ;;  %v234_v57 = vld [vmem:[%s3834_s20 + $0x1e0] sm:$0xff] }
  0x46   : > { %3626 = vmatprep.mubr.msk.f32.mxu1 %vm438_vm0, %v330_v58  ;;  %v362_v58 = vld [vmem:[%s3834_s20 + $0x5e0] sm:$0xff] }
  0x48   : > { %3435 = vmatmul.mubr.msk.f32.gmra.mxu0 %vm438_vm0, %v203_v59  ;;  %v235_v59 = vld [vmem:[%s3834_s20 + $0x1e8] sm:$0xff] }
  0x49   : > { %3627 = vmatmul.mubr.msk.f32.gmra.mxu1 %vm438_vm0, %v331_v60  ;;  %3437 = vmatprep.mubr.msk.f32.mxu0 %vm438_vm0, %v204_v61  ;;  %v363_v60 = vld [vmem:[%s3834_s20 + $0x5e8] sm:$0xff]  ;;  %v236_v61 = vld [vmem:[%s3834_s20 + $0x1f0] sm:$0xff] }
  0x4a   : > { %3629 = vmatprep.mubr.msk.f32.mxu1 %vm438_vm0, %v332_v62  ;;  %v364_v62 = vld [vmem:[%s3834_s20 + $0x5f0] sm:$0xff] }
  0x4c   : > { %3438 = vmatmul.mubr.msk.f32.gmra.mxu0 %vm438_vm0, %v205_v63  ;;  %v237_v63 = vld [vmem:[%s3834_s20 + $0x1f8] sm:$0xff] }
  0x4d   : > { %3630 = vmatmul.mubr.msk.f32.gmra.mxu1 %vm438_vm0, %v333_v0  ;;  %3440 = vmatprep.mubr.msk.f32.mxu0 %vm438_vm0, %v206_v1  ;;  %v365_v0 = vld [vmem:[%s3834_s20 + $0x5f8] sm:$0xff]  ;;  %v238_v1 = vld [vmem:[%s3834_s20 + $0x200] sm:$0xff] }
  0x4e   : > { %3632 = vmatprep.mubr.msk.f32.mxu1 %vm438_vm0, %v334_v2  ;;  %v366_v2 = vld [vmem:[%s3834_s20 + $0x600] sm:$0xff] }
  0x50   : > { %3441 = vmatmul.mubr.msk.f32.gmra.mxu0 %vm438_vm0, %v207_v3  ;;  %v239_v3 = vld [vmem:[%s3834_s20 + $0x208] sm:$0xff] }
  0x51   : > { %3633 = vmatmul.mubr.msk.f32.gmra.mxu1 %vm438_vm0, %v335_v4  ;;  %3443 = vmatprep.mubr.msk.f32.mxu0 %vm438_vm0, %v208_v5  ;;  %v367_v4 = vld [vmem:[%s3834_s20 + $0x608] sm:$0xff]  ;;  %v240_v5 = vld [vmem:[%s3834_s20 + $0x210] sm:$0xff] }
  0x52   : > { %3635 = vmatprep.mubr.msk.f32.mxu1 %vm438_vm0, %v336_v6  ;;  %v368_v6 = vld [vmem:[%s3834_s20 + $0x610] sm:$0xff] }
  0x54   : > { %3444 = vmatmul.mubr.msk.f32.gmra.mxu0 %vm438_vm0, %v209_v7  ;;  %v241_v7 = vld [vmem:[%s3834_s20 + $0x218] sm:$0xff] }
  0x55   : > { %3636 = vmatmul.mubr.msk.f32.gmra.mxu1 %vm438_vm0, %v337_v8  ;;  %3446 = vmatprep.mubr.msk.f32.mxu0 %vm438_vm0, %v210_v9  ;;  %v369_v8 = vld [vmem:[%s3834_s20 + $0x618] sm:$0xff]  ;;  %v242_v9 = vld [vmem:[%s3834_s20 + $0x220] sm:$0xff] }
  0x56   : > { %3638 = vmatprep.mubr.msk.f32.mxu1 %vm438_vm0, %v338_v10  ;;  %v370_v10 = vld [vmem:[%s3834_s20 + $0x620] sm:$0xff] }
  0x58   : > { %3447 = vmatmul.mubr.msk.f32.gmra.mxu0 %vm438_vm0, %v211_v11  ;;  %v243_v11 = vld [vmem:[%s3834_s20 + $0x228] sm:$0xff] }
  0x59   : > { %3639 = vmatmul.mubr.msk.f32.gmra.mxu1 %vm438_vm0, %v339_v12  ;;  %3449 = vmatprep.mubr.msk.f32.mxu0 %vm438_vm0, %v212_v13  ;;  %v371_v12 = vld [vmem:[%s3834_s20 + $0x628] sm:$0xff]  ;;  %v244_v13 = vld [vmem:[%s3834_s20 + $0x230] sm:$0xff] }
  0x5a   : > { %3641 = vmatprep.mubr.msk.f32.mxu1 %vm438_vm0, %v340_v14  ;;  %v372_v14 = vld [vmem:[%s3834_s20 + $0x630] sm:$0xff] }
  0x5c   : > { %3450 = vmatmul.mubr.msk.f32.gmra.mxu0 %vm438_vm0, %v213_v15  ;;  %v245_v15 = vld [vmem:[%s3834_s20 + $0x238] sm:$0xff] }
  0x5d   : > { %3642 = vmatmul.mubr.msk.f32.gmra.mxu1 %vm438_vm0, %v341_v16  ;;  %3452 = vmatprep.mubr.msk.f32.mxu0 %vm438_vm0, %v214_v17  ;;  %v373_v16 = vld [vmem:[%s3834_s20 + $0x638] sm:$0xff]  ;;  %v246_v17 = vld [vmem:[%s3834_s20 + $0x240] sm:$0xff] }
  0x5e   : > { %3644 = vmatprep.mubr.msk.f32.mxu1 %vm438_vm0, %v342_v18  ;;  %v374_v18 = vld [vmem:[%s3834_s20 + $0x640] sm:$0xff] }
  0x60   : > { %3453 = vmatmul.mubr.msk.f32.gmra.mxu0 %vm438_vm0, %v215_v19  ;;  %v247_v19 = vld [vmem:[%s3834_s20 + $0x248] sm:$0xff] }
  0x61   : > { %3645 = vmatmul.mubr.msk.f32.gmra.mxu1 %vm438_vm0, %v343_v20  ;;  %3455 = vmatprep.mubr.msk.f32.mxu0 %vm438_vm0, %v216_v21  ;;  %v375_v20 = vld [vmem:[%s3834_s20 + $0x648] sm:$0xff]  ;;  %v248_v21 = vld [vmem:[%s3834_s20 + $0x250] sm:$0xff] }
  0x62   : > { %3647 = vmatprep.mubr.msk.f32.mxu1 %vm438_vm0, %v344_v22  ;;  %v376_v22 = vld [vmem:[%s3834_s20 + $0x650] sm:$0xff] }
  0x64   : > { %3456 = vmatmul.mubr.msk.f32.gmra.mxu0 %vm438_vm0, %v217_v23  ;;  %v249_v23 = vld [vmem:[%s3834_s20 + $0x258] sm:$0xff] }
  0x65   : > { %3648 = vmatmul.mubr.msk.f32.gmra.mxu1 %vm438_vm0, %v345_v24  ;;  %3458 = vmatprep.mubr.msk.f32.mxu0 %vm438_vm0, %v218_v25  ;;  %v377_v24 = vld [vmem:[%s3834_s20 + $0x658] sm:$0xff]  ;;  %v250_v25 = vld [vmem:[%s3834_s20 + $0x260] sm:$0xff] }
  0x66   : > { %3650 = vmatprep.mubr.msk.f32.mxu1 %vm438_vm0, %v346_v26  ;;  %v378_v26 = vld [vmem:[%s3834_s20 + $0x660] sm:$0xff] }
  0x68   : > { %3459 = vmatmul.mubr.msk.f32.gmra.mxu0 %vm438_vm0, %v219_v27  ;;  %v251_v27 = vld [vmem:[%s3834_s20 + $0x268] sm:$0xff] }
  0x69   : > { %3651 = vmatmul.mubr.msk.f32.gmra.mxu1 %vm438_vm0, %v347_v28  ;;  %3461 = vmatprep.mubr.msk.f32.mxu0 %vm438_vm0, %v220_v29  ;;  %v379_v28 = vld [vmem:[%s3834_s20 + $0x668] sm:$0xff]  ;;  %v252_v29 = vld [vmem:[%s3834_s20 + $0x270] sm:$0xff] }
  0x6a   : > { %3653 = vmatprep.mubr.msk.f32.mxu1 %vm438_vm0, %v348_v30  ;;  %v380_v30 = vld [vmem:[%s3834_s20 + $0x670] sm:$0xff] }
  0x6c   : > { %3462 = vmatmul.mubr.msk.f32.gmra.mxu0 %vm438_vm0, %v221_v31  ;;  %v253_v31 = vld [vmem:[%s3834_s20 + $0x278] sm:$0xff] }
  0x6d   : > { %3654 = vmatmul.mubr.msk.f32.gmra.mxu1 %vm438_vm0, %v349_v32  ;;  %3464 = vmatprep.mubr.msk.f32.mxu0 %vm438_vm0, %v222_v33  ;;  %v381_v32 = vld [vmem:[%s3834_s20 + $0x678] sm:$0xff]  ;;  %v254_v33 = vld [vmem:[%s3834_s20 + $0x280] sm:$0xff] }
  0x6e   : > { %3656 = vmatprep.mubr.msk.f32.mxu1 %vm438_vm0, %v350_v34  ;;  %v382_v34 = vld [vmem:[%s3834_s20 + $0x680] sm:$0xff] }
  0x70   : > { %3465 = vmatmul.mubr.msk.f32.gmra.mxu0 %vm438_vm0, %v223_v35  ;;  %v255_v35 = vld [vmem:[%s3834_s20 + $0x288] sm:$0xff] }
  0x71   : > { %3657 = vmatmul.mubr.msk.f32.gmra.mxu1 %vm438_vm0, %v351_v36  ;;  %3467 = vmatprep.mubr.msk.f32.mxu0 %vm438_vm0, %v224_v37  ;;  %v383_v36 = vld [vmem:[%s3834_s20 + $0x688] sm:$0xff]  ;;  %v256_v37 = vld [vmem:[%s3834_s20 + $0x290] sm:$0xff] }
  0x72   : > { %3659 = vmatprep.mubr.msk.f32.mxu1 %vm438_vm0, %v352_v38  ;;  %v384_v38 = vld [vmem:[%s3834_s20 + $0x690] sm:$0xff] }
  0x74   : > { %3468 = vmatmul.mubr.msk.f32.gmra.mxu0 %vm438_vm0, %v225_v39  ;;  %v257_v39 = vld [vmem:[%s3834_s20 + $0x298] sm:$0xff] }
  0x75   : > { %3660 = vmatmul.mubr.msk.f32.gmra.mxu1 %vm438_vm0, %v353_v40  ;;  %3470 = vmatprep.mubr.msk.f32.mxu0 %vm438_vm0, %v226_v41  ;;  %v385_v40 = vld [vmem:[%s3834_s20 + $0x698] sm:$0xff]  ;;  %v258_v41 = vld [vmem:[%s3834_s20 + $0x2a0] sm:$0xff] }
  0x76   : > { %3662 = vmatprep.mubr.msk.f32.mxu1 %vm438_vm0, %v354_v42  ;;  %v386_v42 = vld [vmem:[%s3834_s20 + $0x6a0] sm:$0xff] }
  0x78   : > { %3471 = vmatmul.mubr.msk.f32.gmra.mxu0 %vm438_vm0, %v227_v43  ;;  %v259_v43 = vld [vmem:[%s3834_s20 + $0x2a8] sm:$0xff] }
  0x79   : > { %3663 = vmatmul.mubr.msk.f32.gmra.mxu1 %vm438_vm0, %v355_v44  ;;  %3473 = vmatprep.mubr.msk.f32.mxu0 %vm438_vm0, %v228_v45  ;;  %v387_v44 = vld [vmem:[%s3834_s20 + $0x6a8] sm:$0xff]  ;;  %v260_v45 = vld [vmem:[%s3834_s20 + $0x2b0] sm:$0xff] }
  0x7a   : > { %3665 = vmatprep.mubr.msk.f32.mxu1 %vm438_vm0, %v356_v46  ;;  %v388_v46 = vld [vmem:[%s3834_s20 + $0x6b0] sm:$0xff] }
  0x7c   : > { %3474 = vmatmul.mubr.msk.f32.gmra.mxu0 %vm438_vm0, %v229_v47  ;;  %v261_v47 = vld [vmem:[%s3834_s20 + $0x2b8] sm:$0xff] }
  0x7d   : > { %3666 = vmatmul.mubr.msk.f32.gmra.mxu1 %vm438_vm0, %v357_v48  ;;  %3476 = vmatprep.mubr.msk.f32.mxu0 %vm438_vm0, %v230_v49  ;;  %v389_v48 = vld [vmem:[%s3834_s20 + $0x6b8] sm:$0xff]  ;;  %v262_v49 = vld [vmem:[%s3834_s20 + $0x2c0] sm:$0xff] }
  0x7e   : > { %3668 = vmatprep.mubr.msk.f32.mxu1 %vm438_vm0, %v358_v50  ;;  %v390_v50 = vld [vmem:[%s3834_s20 + $0x6c0] sm:$0xff] }
  0x80   : > { %3477 = vmatmul.mubr.msk.f32.gmra.mxu0 %vm438_vm0, %v231_v51  ;;  %v263_v51 = vld [vmem:[%s3834_s20 + $0x2c8] sm:$0xff] }
  0x81   : > { %3669 = vmatmul.mubr.msk.f32.gmra.mxu1 %vm438_vm0, %v359_v52  ;;  %3479 = vmatprep.mubr.msk.f32.mxu0 %vm438_vm0, %v232_v53  ;;  %v391_v52 = vld [vmem:[%s3834_s20 + $0x6c8] sm:$0xff]  ;;  %v264_v53 = vld [vmem:[%s3834_s20 + $0x2d0] sm:$0xff] }
  0x82   : > { %3671 = vmatprep.mubr.msk.f32.mxu1 %vm438_vm0, %v360_v54  ;;  %v392_v54 = vld [vmem:[%s3834_s20 + $0x6d0] sm:$0xff] }
  0x84   : > { %3480 = vmatmul.mubr.msk.f32.gmra.mxu0 %vm438_vm0, %v233_v55  ;;  %v265_v55 = vld [vmem:[%s3834_s20 + $0x2d8] sm:$0xff] }
  0x85   : > { %3672 = vmatmul.mubr.msk.f32.gmra.mxu1 %vm438_vm0, %v361_v56  ;;  %3482 = vmatprep.mubr.msk.f32.mxu0 %vm438_vm0, %v234_v57  ;;  %v393_v56 = vld [vmem:[%s3834_s20 + $0x6d8] sm:$0xff]  ;;  %v266_v57 = vld [vmem:[%s3834_s20 + $0x2e0] sm:$0xff] }
  0x86   : > { %3674 = vmatprep.mubr.msk.f32.mxu1 %vm438_vm0, %v362_v58  ;;  %v394_v58 = vld [vmem:[%s3834_s20 + $0x6e0] sm:$0xff] }
  0x88   : > { %3483 = vmatmul.mubr.msk.f32.gmra.mxu0 %vm438_vm0, %v235_v59  ;;  %v267_v59 = vld [vmem:[%s3834_s20 + $0x2e8] sm:$0xff] }
  0x89   : > { %3675 = vmatmul.mubr.msk.f32.gmra.mxu1 %vm438_vm0, %v363_v60  ;;  %3485 = vmatprep.mubr.msk.f32.mxu0 %vm438_vm0, %v236_v61  ;;  %v395_v60 = vld [vmem:[%s3834_s20 + $0x6e8] sm:$0xff]  ;;  %v268_v61 = vld [vmem:[%s3834_s20 + $0x2f0] sm:$0xff] }
  0x8a   : > { %3677 = vmatprep.mubr.msk.f32.mxu1 %vm438_vm0, %v364_v62  ;;  %v396_v62 = vld [vmem:[%s3834_s20 + $0x6f0] sm:$0xff] }
  0x8c   : > { %3486 = vmatmul.mubr.msk.f32.gmra.mxu0 %vm438_vm0, %v237_v63  ;;  %v269_v63 = vld [vmem:[%s3834_s20 + $0x2f8] sm:$0xff] }
  0x8d   : > { %3678 = vmatmul.mubr.msk.f32.gmra.mxu1 %vm438_vm0, %v365_v0  ;;  %3488 = vmatprep.mubr.msk.f32.mxu0 %vm438_vm0, %v238_v1  ;;  %v397_v0 = vld [vmem:[%s3834_s20 + $0x6f8] sm:$0xff]  ;;  %v270_v1 = vld [vmem:[%s3834_s20 + $0x300] sm:$0xff] }
  0x8e   : > { %3680 = vmatprep.mubr.msk.f32.mxu1 %vm438_vm0, %v366_v2  ;;  %v398_v2 = vld [vmem:[%s3834_s20 + $0x700] sm:$0xff] }
  0x90   : > { %3489 = vmatmul.mubr.msk.f32.gmra.mxu0 %vm438_vm0, %v239_v3  ;;  %v271_v3 = vld [vmem:[%s3834_s20 + $0x308] sm:$0xff] }
  0x91   : > { %3681 = vmatmul.mubr.msk.f32.gmra.mxu1 %vm438_vm0, %v367_v4  ;;  %3491 = vmatprep.mubr.msk.f32.mxu0 %vm438_vm0, %v240_v5  ;;  %v399_v4 = vld [vmem:[%s3834_s20 + $0x708] sm:$0xff]  ;;  %v4229_v5 = vld [vmem:[%s5138_s2] ss:$0 sm:$0xff] }
  0x92   : > { %3683 = vmatprep.mubr.msk.f32.mxu1 %vm438_vm0, %v368_v6  ;;  %v272_v6 = vld [vmem:[%s3834_s20 + $0x310] sm:$0xff] }
  0x94   : > { %3492 = vmatmul.mubr.msk.f32.gmra.mxu0 %vm438_vm0, %v241_v7  ;;  %v400_v7 = vld [vmem:[%s3834_s20 + $0x710] sm:$0xff] }
  0x95   : > { %3684 = vmatmul.mubr.msk.f32.gmra.mxu1 %vm438_vm0, %v369_v8  ;;  %3494 = vmatprep.mubr.msk.f32.mxu0 %vm438_vm0, %v242_v9 }
  0x96   : > { %3686 = vmatprep.mubr.msk.f32.mxu1 %vm438_vm0, %v370_v10 }
  0x98   : > { %3495 = vmatmul.mubr.msk.f32.gmra.mxu0 %vm438_vm0, %v243_v11 }
  0x99   : > { %3687 = vmatmul.mubr.msk.f32.gmra.mxu1 %vm438_vm0, %v371_v12  ;;  %3497 = vmatprep.mubr.msk.f32.mxu0 %vm438_vm0, %v244_v13  ;;  %v273_v12 = vld [vmem:[%s3834_s20 + $0x318] sm:$0xff] }
  0x9a   : > { %3689 = vmatprep.mubr.msk.f32.mxu1 %vm438_vm0, %v372_v14  ;;  %v401_v13 = vld [vmem:[%s3834_s20 + $0x718] sm:$0xff] }
  0x9c   : > { %3498 = vmatmul.mubr.msk.f32.gmra.mxu0 %vm438_vm0, %v245_v15 }
  0x9d   : > { %3690 = vmatmul.mubr.msk.f32.gmra.mxu1 %vm438_vm0, %v373_v16  ;;  %3500 = vmatprep.mubr.msk.f32.mxu0 %vm438_vm0, %v246_v17  ;;  %v274_v16 = vld [vmem:[%s3834_s20 + $0x320] sm:$0xff] }
  0x9e   : > { %3692 = vmatprep.mubr.msk.f32.mxu1 %vm438_vm0, %v374_v18  ;;  %v402_v17 = vld [vmem:[%s3834_s20 + $0x720] sm:$0xff] }
  0xa0   : > { %3501 = vmatmul.mubr.msk.f32.gmra.mxu0 %vm438_vm0, %v247_v19 }
  0xa1   : > { %3693 = vmatmul.mubr.msk.f32.gmra.mxu1 %vm438_vm0, %v375_v20  ;;  %3503 = vmatprep.mubr.msk.f32.mxu0 %vm438_vm0, %v248_v21 }
  0xa2   : > { %3695 = vmatprep.mubr.msk.f32.mxu1 %vm438_vm0, %v376_v22 }
  0xa4   : > { %3504 = vmatmul.mubr.msk.f32.gmra.mxu0 %vm438_vm0, %v249_v23 }
  0xa5   : > { %3696 = vmatmul.mubr.msk.f32.gmra.mxu1 %vm438_vm0, %v377_v24  ;;  %3506 = vmatprep.mubr.msk.f32.mxu0 %vm438_vm0, %v250_v25  ;;  %v275_v24 = vld [vmem:[%s3834_s20 + $0x328] sm:$0xff] }
  0xa6   : > { %3698 = vmatprep.mubr.msk.f32.mxu1 %vm438_vm0, %v378_v26  ;;  %v403_v25 = vld [vmem:[%s3834_s20 + $0x728] sm:$0xff] }
  0xa8   : > { %3507 = vmatmul.mubr.msk.f32.gmra.mxu0 %vm438_vm0, %v251_v27 }
  0xa9   : > { %3699 = vmatmul.mubr.msk.f32.gmra.mxu1 %vm438_vm0, %v379_v28  ;;  %3509 = vmatprep.mubr.msk.f32.mxu0 %vm438_vm0, %v252_v29  ;;  %v276_v28 = vld [vmem:[%s3834_s20 + $0x330] sm:$0xff] }
  0xaa   : > { %3701 = vmatprep.mubr.msk.f32.mxu1 %vm438_vm0, %v380_v30  ;;  %v404_v29 = vld [vmem:[%s3834_s20 + $0x730] sm:$0xff] }
  0xac   : > { %3510 = vmatmul.mubr.msk.f32.gmra.mxu0 %vm438_vm0, %v253_v31 }
  0xad   : > { %3702 = vmatmul.mubr.msk.f32.gmra.mxu1 %vm438_vm0, %v381_v32  ;;  %3512 = vmatprep.mubr.msk.f32.mxu0 %vm438_vm0, %v254_v33 }
  0xae   : > { %3704 = vmatprep.mubr.msk.f32.mxu1 %vm438_vm0, %v382_v34 }
  0xb0   : > { %3513 = vmatmul.mubr.msk.f32.gmra.mxu0 %vm438_vm0, %v255_v35 }
  0xb1   : > { %3705 = vmatmul.mubr.msk.f32.gmra.mxu1 %vm438_vm0, %v383_v36  ;;  %3515 = vmatprep.mubr.msk.f32.mxu0 %vm438_vm0, %v256_v37  ;;  %v277_v36 = vld [vmem:[%s3834_s20 + $0x338] sm:$0xff] }
  0xb2   : > { %3707 = vmatprep.mubr.msk.f32.mxu1 %vm438_vm0, %v384_v38  ;;  %v405_v37 = vld [vmem:[%s3834_s20 + $0x738] sm:$0xff] }
  0xb4   : > { %3516 = vmatmul.mubr.msk.f32.gmra.mxu0 %vm438_vm0, %v257_v39 }
  0xb5   : > { %3708 = vmatmul.mubr.msk.f32.gmra.mxu1 %vm438_vm0, %v385_v40  ;;  %3518 = vmatprep.mubr.msk.f32.mxu0 %vm438_vm0, %v258_v41  ;;  %v278_v40 = vld [vmem:[%s3834_s20 + $0x340] sm:$0xff] }
  0xb6   : > { %3710 = vmatprep.mubr.msk.f32.mxu1 %vm438_vm0, %v386_v42  ;;  %v406_v41 = vld [vmem:[%s3834_s20 + $0x740] sm:$0xff] }
  0xb8   : > { %3519 = vmatmul.mubr.msk.f32.gmra.mxu0 %vm438_vm0, %v259_v43 }
  0xb9   : > { %3711 = vmatmul.mubr.msk.f32.gmra.mxu1 %vm438_vm0, %v387_v44  ;;  %3521 = vmatprep.mubr.msk.f32.mxu0 %vm438_vm0, %v260_v45 }
  0xba   : > { %3713 = vmatprep.mubr.msk.f32.mxu1 %vm438_vm0, %v388_v46 }
  0xbc   : > { %3522 = vmatmul.mubr.msk.f32.gmra.mxu0 %vm438_vm0, %v261_v47 }
  0xbd   : > { %3714 = vmatmul.mubr.msk.f32.gmra.mxu1 %vm438_vm0, %v389_v48  ;;  %3524 = vmatprep.mubr.msk.f32.mxu0 %vm438_vm0, %v262_v49  ;;  %v279_v48 = vld [vmem:[%s3834_s20 + $0x348] sm:$0xff] }
  0xbe   : > { %3716 = vmatprep.mubr.msk.f32.mxu1 %vm438_vm0, %v390_v50  ;;  %v407_v49 = vld [vmem:[%s3834_s20 + $0x748] sm:$0xff] }
  0xc0   : > { %3525 = vmatmul.mubr.msk.f32.gmra.mxu0 %vm438_vm0, %v263_v51 }
  0xc1   : > { %3717 = vmatmul.mubr.msk.f32.gmra.mxu1 %vm438_vm0, %v391_v52  ;;  %3527 = vmatprep.mubr.msk.f32.mxu0 %vm438_vm0, %v264_v53  ;;  %v280_v52 = vld [vmem:[%s3834_s20 + $0x350] sm:$0xff] }
  0xc2   : > { %3719 = vmatprep.mubr.msk.f32.mxu1 %vm438_vm0, %v392_v54  ;;  %v408_v53 = vld [vmem:[%s3834_s20 + $0x750] sm:$0xff] }
  0xc4   : > { %3528 = vmatmul.mubr.msk.f32.gmra.mxu0 %vm438_vm0, %v265_v55 }
  0xc5   : > { %3720 = vmatmul.mubr.msk.f32.gmra.mxu1 %vm438_vm0, %v393_v56  ;;  %3530 = vmatprep.mubr.msk.f32.mxu0 %vm438_vm0, %v266_v57 }
  0xc6   : > { %3722 = vmatprep.mubr.msk.f32.mxu1 %vm438_vm0, %v394_v58 }
  0xc8   : > { %3531 = vmatmul.mubr.msk.f32.gmra.mxu0 %vm438_vm0, %v267_v59 }
  0xc9   : > { %3723 = vmatmul.mubr.msk.f32.gmra.mxu1 %vm438_vm0, %v395_v60  ;;  %3533 = vmatprep.mubr.msk.f32.mxu0 %vm438_vm0, %v268_v61  ;;  %v281_v60 = vld [vmem:[%s3834_s20 + $0x358] sm:$0xff] }
  0xca   : > { %3725 = vmatprep.mubr.msk.f32.mxu1 %vm438_vm0, %v396_v62  ;;  %v409_v61 = vld [vmem:[%s3834_s20 + $0x758] sm:$0xff] }
  0xcc   : > { %3534 = vmatmul.mubr.msk.f32.gmra.mxu0 %vm438_vm0, %v269_v63 }
  0xcd   : > { %3726 = vmatmul.mubr.msk.f32.gmra.mxu1 %vm438_vm0, %v397_v0  ;;  %3536 = vmatprep.mubr.msk.f32.mxu0 %vm438_vm0, %v270_v1  ;;  %v282_v0 = vld [vmem:[%s3834_s20 + $0x360] sm:$0xff] }
  0xce   : > { %3728 = vmatprep.mubr.msk.f32.mxu1 %vm438_vm0, %v398_v2  ;;  %v410_v1 = vld [vmem:[%s3834_s20 + $0x760] sm:$0xff] }
  0xd0   : > { %v3394_v8 = vpop.f32.mrf.mxu0  ;;  %3537 = vmatmul.mubr.msk.f32.gmra.mxu0 %vm438_vm0, %v271_v3 }
  0xd1   : > { %v3586_v9 = vpop.f32.mrf.mxu1  ;;  %3729 = vmatmul.mubr.msk.f32.gmra.mxu1 %vm438_vm0, %v399_v4  ;;  %v1279_v10 = vadd.f32 %v3394_v8, %v4229_v5  ;;  %3539 = vmatprep.mubr.msk.f32.mxu0 %vm438_vm0, %v272_v6 }
  0xd2   : > { %v1919_v11 = vadd.f32 %v3586_v9, %v4229_v5  ;;  %3731 = vmatprep.mubr.msk.f32.mxu1 %vm438_vm0, %v400_v7  ;;  %v1273_v14 = vpop.f32.mrf.mxu0  ;;  %v283_v9 = vld [vmem:[%s3834_s20 + $0x368] sm:$0xff] }
  0xd3   : > { %v1913_v15 = vpop.f32.mrf.mxu1  ;;  %2554 = vst.msk [vmem:[%s4238_s25 + $0x8] sm:$0xff] %vm2552_vm1, %v1279_v10  ;;  %v1274_v18 = vadd.f32 %v4229_v5, %v1273_v14  ;;  %v411_v10 = vld [vmem:[%s3834_s20 + $0x768] sm:$0xff]  ;;  %v412_v14 = vld [vmem:[%s3834_s20 + $0x770] sm:$0xff] }
  0xd4   : > { %2682 = vst.msk [vmem:[%s4238_s25 + $0x408] sm:$0xff] %vm2552_vm1, %v1919_v11  ;;  %v1914_v19 = vadd.f32 %v4229_v5, %v1913_v15  ;;  %v3397_v20 = vpop.f32.mrf.mxu0  ;;  %3540 = vmatmul.mubr.msk.f32.gmra.mxu0 %vm438_vm0, %v273_v12 }
  0xd5   : > { %v3589_v21 = vpop.f32.mrf.mxu1  ;;  %3732 = vmatmul.mubr.msk.f32.gmra.mxu1 %vm438_vm0, %v401_v13  ;;  %2553 = vst.msk [vmem:[%s4238_s25] sm:$0xff] %vm2552_vm1, %v1274_v18  ;;  %v1289_v22 = vadd.f32 %v3397_v20, %v4229_v5  ;;  %3542 = vmatprep.mubr.msk.f32.mxu0 %vm438_vm0, %v274_v16  ;;  %v284_v13 = vld [vmem:[%s3834_s20 + $0x370] sm:$0xff] }
  0xd6   : > { %2681 = vst.msk [vmem:[%s4238_s25 + $0x400] sm:$0xff] %vm2552_vm1, %v1914_v19  ;;  %v1929_v23 = vadd.f32 %v3589_v21, %v4229_v5  ;;  %3734 = vmatprep.mubr.msk.f32.mxu1 %vm438_vm0, %v402_v17  ;;  %v1283_v26 = vpop.f32.mrf.mxu0  ;;  %v285_v21 = vld [vmem:[%s3834_s20 + $0x378] sm:$0xff] }
  0xd7   : > { %v1923_v27 = vpop.f32.mrf.mxu1  ;;  %2556 = vst.msk [vmem:[%s4238_s25 + $0x18] sm:$0xff] %vm2552_vm1, %v1289_v22  ;;  %v1284_v30 = vadd.f32 %v4229_v5, %v1283_v26  ;;  %v413_v22 = vld [vmem:[%s3834_s20 + $0x778] sm:$0xff]  ;;  %v414_v26 = vld [vmem:[%s3834_s20 + $0x780] sm:$0xff] }
  0xd8   : > { %2684 = vst.msk [vmem:[%s4238_s25 + $0x418] sm:$0xff] %vm2552_vm1, %v1929_v23  ;;  %v1924_v31 = vadd.f32 %v4229_v5, %v1923_v27  ;;  %v3400_v32 = vpop.f32.mrf.mxu0  ;;  %3543 = vmatmul.mubr.msk.f32.gmra.mxu0 %vm438_vm0, %v275_v24 }
  0xd9   : > { %v3592_v33 = vpop.f32.mrf.mxu1  ;;  %3735 = vmatmul.mubr.msk.f32.gmra.mxu1 %vm438_vm0, %v403_v25  ;;  %2555 = vst.msk [vmem:[%s4238_s25 + $0x10] sm:$0xff] %vm2552_vm1, %v1284_v30  ;;  %v1299_v34 = vadd.f32 %v3400_v32, %v4229_v5  ;;  %3545 = vmatprep.mubr.msk.f32.mxu0 %vm438_vm0, %v276_v28  ;;  %v286_v25 = vld [vmem:[%s3834_s20 + $0x380] sm:$0xff] }
  0xda   : > { %2683 = vst.msk [vmem:[%s4238_s25 + $0x410] sm:$0xff] %vm2552_vm1, %v1924_v31  ;;  %v1939_v35 = vadd.f32 %v3592_v33, %v4229_v5  ;;  %3737 = vmatprep.mubr.msk.f32.mxu1 %vm438_vm0, %v404_v29  ;;  %v1293_v38 = vpop.f32.mrf.mxu0  ;;  %v287_v33 = vld [vmem:[%s3834_s20 + $0x388] sm:$0xff] }
  0xdb   : > { %v1933_v39 = vpop.f32.mrf.mxu1  ;;  %2558 = vst.msk [vmem:[%s4238_s25 + $0x28] sm:$0xff] %vm2552_vm1, %v1299_v34  ;;  %v1294_v42 = vadd.f32 %v4229_v5, %v1293_v38  ;;  %v415_v34 = vld [vmem:[%s3834_s20 + $0x788] sm:$0xff]  ;;  %v416_v38 = vld [vmem:[%s3834_s20 + $0x790] sm:$0xff] }
  0xdc   : > { %2686 = vst.msk [vmem:[%s4238_s25 + $0x428] sm:$0xff] %vm2552_vm1, %v1939_v35  ;;  %v1934_v43 = vadd.f32 %v4229_v5, %v1933_v39  ;;  %v3403_v44 = vpop.f32.mrf.mxu0  ;;  %3546 = vmatmul.mubr.msk.f32.gmra.mxu0 %vm438_vm0, %v277_v36 }
  0xdd   : > { %v3595_v45 = vpop.f32.mrf.mxu1  ;;  %3738 = vmatmul.mubr.msk.f32.gmra.mxu1 %vm438_vm0, %v405_v37  ;;  %2557 = vst.msk [vmem:[%s4238_s25 + $0x20] sm:$0xff] %vm2552_vm1, %v1294_v42  ;;  %v1309_v46 = vadd.f32 %v3403_v44, %v4229_v5  ;;  %3548 = vmatprep.mubr.msk.f32.mxu0 %vm438_vm0, %v278_v40  ;;  %v288_v37 = vld [vmem:[%s3834_s20 + $0x390] sm:$0xff] }
  0xde   : > { %2685 = vst.msk [vmem:[%s4238_s25 + $0x420] sm:$0xff] %vm2552_vm1, %v1934_v43  ;;  %v1949_v47 = vadd.f32 %v3595_v45, %v4229_v5  ;;  %3740 = vmatprep.mubr.msk.f32.mxu1 %vm438_vm0, %v406_v41  ;;  %v1303_v50 = vpop.f32.mrf.mxu0  ;;  %v289_v45 = vld [vmem:[%s3834_s20 + $0x398] sm:$0xff] }
  0xdf   : > { %v1943_v51 = vpop.f32.mrf.mxu1  ;;  %2560 = vst.msk [vmem:[%s4238_s25 + $0x38] sm:$0xff] %vm2552_vm1, %v1309_v46  ;;  %v1304_v54 = vadd.f32 %v4229_v5, %v1303_v50  ;;  %v417_v46 = vld [vmem:[%s3834_s20 + $0x798] sm:$0xff]  ;;  %v418_v50 = vld [vmem:[%s3834_s20 + $0x7a0] sm:$0xff] }
  0xe0   : > { %2688 = vst.msk [vmem:[%s4238_s25 + $0x438] sm:$0xff] %vm2552_vm1, %v1949_v47  ;;  %v1944_v55 = vadd.f32 %v4229_v5, %v1943_v51  ;;  %v3406_v56 = vpop.f32.mrf.mxu0  ;;  %3549 = vmatmul.mubr.msk.f32.gmra.mxu0 %vm438_vm0, %v279_v48 }
  0xe1   : > { %v3598_v57 = vpop.f32.mrf.mxu1  ;;  %3741 = vmatmul.mubr.msk.f32.gmra.mxu1 %vm438_vm0, %v407_v49  ;;  %2559 = vst.msk [vmem:[%s4238_s25 + $0x30] sm:$0xff] %vm2552_vm1, %v1304_v54  ;;  %v1319_v58 = vadd.f32 %v3406_v56, %v4229_v5  ;;  %3551 = vmatprep.mubr.msk.f32.mxu0 %vm438_vm0, %v280_v52  ;;  %v290_v49 = vld [vmem:[%s3834_s20 + $0x3a0] sm:$0xff] }
  0xe2   : > { %2687 = vst.msk [vmem:[%s4238_s25 + $0x430] sm:$0xff] %vm2552_vm1, %v1944_v55  ;;  %v1959_v59 = vadd.f32 %v3598_v57, %v4229_v5  ;;  %3743 = vmatprep.mubr.msk.f32.mxu1 %vm438_vm0, %v408_v53  ;;  %v1313_v62 = vpop.f32.mrf.mxu0  ;;  %v291_v57 = vld [vmem:[%s3834_s20 + $0x3a8] sm:$0xff] }
  0xe3   : > { %v1953_v63 = vpop.f32.mrf.mxu1  ;;  %2562 = vst.msk [vmem:[%s4238_s25 + $0x48] sm:$0xff] %vm2552_vm1, %v1319_v58  ;;  %v1314_v2 = vadd.f32 %v4229_v5, %v1313_v62  ;;  %v419_v58 = vld [vmem:[%s3834_s20 + $0x7a8] sm:$0xff]  ;;  %v420_v62 = vld [vmem:[%s3834_s20 + $0x7b0] sm:$0xff] }
  0xe4   : > { %2690 = vst.msk [vmem:[%s4238_s25 + $0x448] sm:$0xff] %vm2552_vm1, %v1959_v59  ;;  %v1954_v3 = vadd.f32 %v4229_v5, %v1953_v63  ;;  %v3409_v4 = vpop.f32.mrf.mxu0  ;;  %3552 = vmatmul.mubr.msk.f32.gmra.mxu0 %vm438_vm0, %v281_v60 }
  0xe5   : > { %v3601_v6 = vpop.f32.mrf.mxu1  ;;  %3744 = vmatmul.mubr.msk.f32.gmra.mxu1 %vm438_vm0, %v409_v61  ;;  %2561 = vst.msk [vmem:[%s4238_s25 + $0x40] sm:$0xff] %vm2552_vm1, %v1314_v2  ;;  %v1329_v7 = vadd.f32 %v3409_v4, %v4229_v5  ;;  %3554 = vmatprep.mubr.msk.f32.mxu0 %vm438_vm0, %v282_v0  ;;  %v292_v61 = vld [vmem:[%s3834_s20 + $0x3b0] sm:$0xff] }
  0xe6   : > { %2689 = vst.msk [vmem:[%s4238_s25 + $0x440] sm:$0xff] %vm2552_vm1, %v1954_v3  ;;  %v1969_v8 = vadd.f32 %v3601_v6, %v4229_v5  ;;  %3746 = vmatprep.mubr.msk.f32.mxu1 %vm438_vm0, %v410_v1  ;;  %v1323_v11 = vpop.f32.mrf.mxu0  ;;  %v293_v6 = vld [vmem:[%s3834_s20 + $0x3b8] sm:$0xff] }
  0xe7   : > { %v1963_v12 = vpop.f32.mrf.mxu1  ;;  %2564 = vst.msk [vmem:[%s4238_s25 + $0x58] sm:$0xff] %vm2552_vm1, %v1329_v7  ;;  %v1324_v15 = vadd.f32 %v4229_v5, %v1323_v11  ;;  %v421_v7 = vld [vmem:[%s3834_s20 + $0x7b8] sm:$0xff]  ;;  %v422_v11 = vld [vmem:[%s3834_s20 + $0x7c0] sm:$0xff] }
  0xe8   : > { %2692 = vst.msk [vmem:[%s4238_s25 + $0x458] sm:$0xff] %vm2552_vm1, %v1969_v8  ;;  %v1964_v16 = vadd.f32 %v4229_v5, %v1963_v12  ;;  %v3412_v17 = vpop.f32.mrf.mxu0  ;;  %3555 = vmatmul.mubr.msk.f32.gmra.mxu0 %vm438_vm0, %v283_v9 }
  0xe9   : > { %v3604_v18 = vpop.f32.mrf.mxu1  ;;  %3747 = vmatmul.mubr.msk.f32.gmra.mxu1 %vm438_vm0, %v411_v10  ;;  %2563 = vst.msk [vmem:[%s4238_s25 + $0x50] sm:$0xff] %vm2552_vm1, %v1324_v15  ;;  %v1339_v19 = vadd.f32 %v3412_v17, %v4229_v5  ;;  %3557 = vmatprep.mubr.msk.f32.mxu0 %vm438_vm0, %v284_v13  ;;  %v294_v10 = vld [vmem:[%s3834_s20 + $0x3c0] sm:$0xff] }
  0xea   : > { %2691 = vst.msk [vmem:[%s4238_s25 + $0x450] sm:$0xff] %vm2552_vm1, %v1964_v16  ;;  %v1979_v20 = vadd.f32 %v3604_v18, %v4229_v5  ;;  %3749 = vmatprep.mubr.msk.f32.mxu1 %vm438_vm0, %v412_v14  ;;  %v1333_v23 = vpop.f32.mrf.mxu0  ;;  %v295_v18 = vld [vmem:[%s3834_s20 + $0x3c8] sm:$0xff] }
  0xeb   : > { %v1973_v24 = vpop.f32.mrf.mxu1  ;;  %2566 = vst.msk [vmem:[%s4238_s25 + $0x68] sm:$0xff] %vm2552_vm1, %v1339_v19  ;;  %v1334_v27 = vadd.f32 %v4229_v5, %v1333_v23  ;;  %v423_v19 = vld [vmem:[%s3834_s20 + $0x7c8] sm:$0xff]  ;;  %v424_v23 = vld [vmem:[%s3834_s20 + $0x7d0] sm:$0xff] }
  0xec   : > { %2694 = vst.msk [vmem:[%s4238_s25 + $0x468] sm:$0xff] %vm2552_vm1, %v1979_v20  ;;  %v1974_v28 = vadd.f32 %v4229_v5, %v1973_v24  ;;  %v3415_v29 = vpop.f32.mrf.mxu0  ;;  %3558 = vmatmul.mubr.msk.f32.gmra.mxu0 %vm438_vm0, %v285_v21 }
  0xed   : > { %v3607_v30 = vpop.f32.mrf.mxu1  ;;  %3750 = vmatmul.mubr.msk.f32.gmra.mxu1 %vm438_vm0, %v413_v22  ;;  %2565 = vst.msk [vmem:[%s4238_s25 + $0x60] sm:$0xff] %vm2552_vm1, %v1334_v27  ;;  %v1349_v31 = vadd.f32 %v3415_v29, %v4229_v5  ;;  %3560 = vmatprep.mubr.msk.f32.mxu0 %vm438_vm0, %v286_v25  ;;  %v296_v22 = vld [vmem:[%s3834_s20 + $0x3d0] sm:$0xff] }
  0xee   : > { %2693 = vst.msk [vmem:[%s4238_s25 + $0x460] sm:$0xff] %vm2552_vm1, %v1974_v28  ;;  %v1989_v32 = vadd.f32 %v3607_v30, %v4229_v5  ;;  %3752 = vmatprep.mubr.msk.f32.mxu1 %vm438_vm0, %v414_v26  ;;  %v1343_v35 = vpop.f32.mrf.mxu0  ;;  %v297_v30 = vld [vmem:[%s3834_s20 + $0x3d8] sm:$0xff] }
  0xef   : > { %v1983_v36 = vpop.f32.mrf.mxu1  ;;  %2568 = vst.msk [vmem:[%s4238_s25 + $0x78] sm:$0xff] %vm2552_vm1, %v1349_v31  ;;  %v1344_v39 = vadd.f32 %v4229_v5, %v1343_v35  ;;  %v425_v31 = vld [vmem:[%s3834_s20 + $0x7d8] sm:$0xff]  ;;  %v426_v35 = vld [vmem:[%s3834_s20 + $0x7e0] sm:$0xff] }
  0xf0   : > { %2696 = vst.msk [vmem:[%s4238_s25 + $0x478] sm:$0xff] %vm2552_vm1, %v1989_v32  ;;  %v1984_v40 = vadd.f32 %v4229_v5, %v1983_v36  ;;  %v3418_v41 = vpop.f32.mrf.mxu0  ;;  %3561 = vmatmul.mubr.msk.f32.gmra.mxu0 %vm438_vm0, %v287_v33 }
  0xf1   : > { %v3610_v42 = vpop.f32.mrf.mxu1  ;;  %3753 = vmatmul.mubr.msk.f32.gmra.mxu1 %vm438_vm0, %v415_v34  ;;  %2567 = vst.msk [vmem:[%s4238_s25 + $0x70] sm:$0xff] %vm2552_vm1, %v1344_v39  ;;  %v1359_v43 = vadd.f32 %v3418_v41, %v4229_v5  ;;  %3563 = vmatprep.mubr.msk.f32.mxu0 %vm438_vm0, %v288_v37  ;;  %v298_v34 = vld [vmem:[%s3834_s20 + $0x3e0] sm:$0xff] }
  0xf2   : > { %2695 = vst.msk [vmem:[%s4238_s25 + $0x470] sm:$0xff] %vm2552_vm1, %v1984_v40  ;;  %v1999_v44 = vadd.f32 %v3610_v42, %v4229_v5  ;;  %3755 = vmatprep.mubr.msk.f32.mxu1 %vm438_vm0, %v416_v38  ;;  %v1353_v47 = vpop.f32.mrf.mxu0  ;;  %v299_v42 = vld [vmem:[%s3834_s20 + $0x3e8] sm:$0xff] }
  0xf3   : > { %v1993_v48 = vpop.f32.mrf.mxu1  ;;  %2570 = vst.msk [vmem:[%s4238_s25 + $0x88] sm:$0xff] %vm2552_vm1, %v1359_v43  ;;  %v1354_v51 = vadd.f32 %v4229_v5, %v1353_v47  ;;  %v427_v43 = vld [vmem:[%s3834_s20 + $0x7e8] sm:$0xff]  ;;  %v428_v47 = vld [vmem:[%s3834_s20 + $0x7f0] sm:$0xff] }
  0xf4   : > { %2698 = vst.msk [vmem:[%s4238_s25 + $0x488] sm:$0xff] %vm2552_vm1, %v1999_v44  ;;  %v1994_v52 = vadd.f32 %v4229_v5, %v1993_v48  ;;  %v3421_v53 = vpop.f32.mrf.mxu0  ;;  %3564 = vmatmul.mubr.msk.f32.gmra.mxu0 %vm438_vm0, %v289_v45 }
  0xf5   : > { %v3613_v54 = vpop.f32.mrf.mxu1  ;;  %3756 = vmatmul.mubr.msk.f32.gmra.mxu1 %vm438_vm0, %v417_v46  ;;  %2569 = vst.msk [vmem:[%s4238_s25 + $0x80] sm:$0xff] %vm2552_vm1, %v1354_v51  ;;  %v1369_v55 = vadd.f32 %v3421_v53, %v4229_v5  ;;  %3566 = vmatprep.mubr.msk.f32.mxu0 %vm438_vm0, %v290_v49  ;;  %v300_v46 = vld [vmem:[%s3834_s20 + $0x3f0] sm:$0xff] }
  0xf6   : > { %2697 = vst.msk [vmem:[%s4238_s25 + $0x480] sm:$0xff] %vm2552_vm1, %v1994_v52  ;;  %v2009_v56 = vadd.f32 %v3613_v54, %v4229_v5  ;;  %3758 = vmatprep.mubr.msk.f32.mxu1 %vm438_vm0, %v418_v50  ;;  %v1363_v59 = vpop.f32.mrf.mxu0  ;;  %v301_v54 = vld [vmem:[%s3834_s20 + $0x3f8] sm:$0xff] }
  0xf7   : > { %v2003_v60 = vpop.f32.mrf.mxu1  ;;  %2572 = vst.msk [vmem:[%s4238_s25 + $0x98] sm:$0xff] %vm2552_vm1, %v1369_v55  ;;  %v1364_v63 = vadd.f32 %v4229_v5, %v1363_v59  ;;  %v429_v55 = vld [vmem:[%s3834_s20 + $0x7f8] sm:$0xff] }
  0xf8   : > { %2700 = vst.msk [vmem:[%s4238_s25 + $0x498] sm:$0xff] %vm2552_vm1, %v2009_v56  ;;  %v2004_v0 = vadd.f32 %v4229_v5, %v2003_v60  ;;  %v3424_v1 = vpop.f32.mrf.mxu0  ;;  %3567 = vmatmul.mubr.msk.f32.gmra.mxu0 %vm438_vm0, %v291_v57 }
  0xf9   : > { %v3616_v2 = vpop.f32.mrf.mxu1  ;;  %3759 = vmatmul.mubr.msk.f32.gmra.mxu1 %vm438_vm0, %v419_v58  ;;  %2571 = vst.msk [vmem:[%s4238_s25 + $0x90] sm:$0xff] %vm2552_vm1, %v1364_v63  ;;  %v1379_v3 = vadd.f32 %v3424_v1, %v4229_v5  ;;  %3569 = vmatprep.mubr.msk.f32.mxu0 %vm438_vm0, %v292_v61 }
  0xfa   : > { %2699 = vst.msk [vmem:[%s4238_s25 + $0x490] sm:$0xff] %vm2552_vm1, %v2004_v0  ;;  %v2019_v4 = vadd.f32 %v3616_v2, %v4229_v5  ;;  %3761 = vmatprep.mubr.msk.f32.mxu1 %vm438_vm0, %v420_v62  ;;  %v1373_v8 = vpop.f32.mrf.mxu0 }
  0xfb   : > { %v2013_v9 = vpop.f32.mrf.mxu1  ;;  %2574 = vst.msk [vmem:[%s4238_s25 + $0xa8] sm:$0xff] %vm2552_vm1, %v1379_v3  ;;  %v1374_v12 = vadd.f32 %v4229_v5, %v1373_v8 }
  0xfc   : > { %2702 = vst.msk [vmem:[%s4238_s25 + $0x4a8] sm:$0xff] %vm2552_vm1, %v2019_v4  ;;  %v2014_v13 = vadd.f32 %v4229_v5, %v2013_v9  ;;  %v3427_v14 = vpop.f32.mrf.mxu0  ;;  %3570 = vmatmul.mubr.msk.f32.gmra.mxu0 %vm438_vm0, %v293_v6 }
  0xfd   : > { %v3619_v15 = vpop.f32.mrf.mxu1  ;;  %3762 = vmatmul.mubr.msk.f32.gmra.mxu1 %vm438_vm0, %v421_v7  ;;  %2573 = vst.msk [vmem:[%s4238_s25 + $0xa0] sm:$0xff] %vm2552_vm1, %v1374_v12  ;;  %v1389_v16 = vadd.f32 %v3427_v14, %v4229_v5  ;;  %3572 = vmatprep.mubr.msk.f32.mxu0 %vm438_vm0, %v294_v10 }
  0xfe   : > { %2701 = vst.msk [vmem:[%s4238_s25 + $0x4a0] sm:$0xff] %vm2552_vm1, %v2014_v13  ;;  %v2029_v17 = vadd.f32 %v3619_v15, %v4229_v5  ;;  %3764 = vmatprep.mubr.msk.f32.mxu1 %vm438_vm0, %v422_v11  ;;  %v1383_v20 = vpop.f32.mrf.mxu0 }
  0xff   : > { %v2023_v21 = vpop.f32.mrf.mxu1  ;;  %2576 = vst.msk [vmem:[%s4238_s25 + $0xb8] sm:$0xff] %vm2552_vm1, %v1389_v16  ;;  %v1384_v24 = vadd.f32 %v4229_v5, %v1383_v20 }
 0x100   : > { %2704 = vst.msk [vmem:[%s4238_s25 + $0x4b8] sm:$0xff] %vm2552_vm1, %v2029_v17  ;;  %v2024_v25 = vadd.f32 %v4229_v5, %v2023_v21  ;;  %v3430_v26 = vpop.f32.mrf.mxu0  ;;  %3573 = vmatmul.mubr.msk.f32.gmra.mxu0 %vm438_vm0, %v295_v18 }
 0x101   : > { %v3622_v27 = vpop.f32.mrf.mxu1  ;;  %3765 = vmatmul.mubr.msk.f32.gmra.mxu1 %vm438_vm0, %v423_v19  ;;  %2575 = vst.msk [vmem:[%s4238_s25 + $0xb0] sm:$0xff] %vm2552_vm1, %v1384_v24  ;;  %v1399_v28 = vadd.f32 %v3430_v26, %v4229_v5  ;;  %3575 = vmatprep.mubr.msk.f32.mxu0 %vm438_vm0, %v296_v22 }
 0x102   : > { %2703 = vst.msk [vmem:[%s4238_s25 + $0x4b0] sm:$0xff] %vm2552_vm1, %v2024_v25  ;;  %v2039_v29 = vadd.f32 %v3622_v27, %v4229_v5  ;;  %3767 = vmatprep.mubr.msk.f32.mxu1 %vm438_vm0, %v424_v23  ;;  %v1393_v32 = vpop.f32.mrf.mxu0 }
 0x103   : > { %v2033_v33 = vpop.f32.mrf.mxu1  ;;  %2578 = vst.msk [vmem:[%s4238_s25 + $0xc8] sm:$0xff] %vm2552_vm1, %v1399_v28  ;;  %v1394_v36 = vadd.f32 %v4229_v5, %v1393_v32 }
 0x104   : > { %2706 = vst.msk [vmem:[%s4238_s25 + $0x4c8] sm:$0xff] %vm2552_vm1, %v2039_v29  ;;  %v2034_v37 = vadd.f32 %v4229_v5, %v2033_v33  ;;  %v3433_v38 = vpop.f32.mrf.mxu0  ;;  %3576 = vmatmul.mubr.msk.f32.gmra.mxu0 %vm438_vm0, %v297_v30 }
 0x105   : > { %v3625_v39 = vpop.f32.mrf.mxu1  ;;  %3768 = vmatmul.mubr.msk.f32.gmra.mxu1 %vm438_vm0, %v425_v31  ;;  %2577 = vst.msk [vmem:[%s4238_s25 + $0xc0] sm:$0xff] %vm2552_vm1, %v1394_v36  ;;  %v1409_v40 = vadd.f32 %v3433_v38, %v4229_v5  ;;  %3578 = vmatprep.mubr.msk.f32.mxu0 %vm438_vm0, %v298_v34 }
 0x106   : > { %2705 = vst.msk [vmem:[%s4238_s25 + $0x4c0] sm:$0xff] %vm2552_vm1, %v2034_v37  ;;  %v2049_v41 = vadd.f32 %v3625_v39, %v4229_v5  ;;  %3770 = vmatprep.mubr.msk.f32.mxu1 %vm438_vm0, %v426_v35  ;;  %v1403_v44 = vpop.f32.mrf.mxu0 }
 0x107   : > { %v2043_v45 = vpop.f32.mrf.mxu1  ;;  %2580 = vst.msk [vmem:[%s4238_s25 + $0xd8] sm:$0xff] %vm2552_vm1, %v1409_v40  ;;  %v1404_v48 = vadd.f32 %v4229_v5, %v1403_v44 }
 0x108   : > { %2708 = vst.msk [vmem:[%s4238_s25 + $0x4d8] sm:$0xff] %vm2552_vm1, %v2049_v41  ;;  %v2044_v49 = vadd.f32 %v4229_v5, %v2043_v45  ;;  %v3436_v50 = vpop.f32.mrf.mxu0  ;;  %3579 = vmatmul.mubr.msk.f32.gmra.mxu0 %vm438_vm0, %v299_v42 }
 0x109   : > { %v3628_v51 = vpop.f32.mrf.mxu1  ;;  %3771 = vmatmul.mubr.msk.f32.gmra.mxu1 %vm438_vm0, %v427_v43  ;;  %2579 = vst.msk [vmem:[%s4238_s25 + $0xd0] sm:$0xff] %vm2552_vm1, %v1404_v48  ;;  %v1419_v52 = vadd.f32 %v3436_v50, %v4229_v5  ;;  %3581 = vmatprep.mubr.msk.f32.mxu0 %vm438_vm0, %v300_v46 }
 0x10a   : > { %2707 = vst.msk [vmem:[%s4238_s25 + $0x4d0] sm:$0xff] %vm2552_vm1, %v2044_v49  ;;  %v2059_v53 = vadd.f32 %v3628_v51, %v4229_v5  ;;  %3773 = vmatprep.mubr.msk.f32.mxu1 %vm438_vm0, %v428_v47  ;;  %v1413_v56 = vpop.f32.mrf.mxu0 }
 0x10b   : > { %v2053_v57 = vpop.f32.mrf.mxu1  ;;  %2582 = vst.msk [vmem:[%s4238_s25 + $0xe8] sm:$0xff] %vm2552_vm1, %v1419_v52  ;;  %v1414_v58 = vadd.f32 %v4229_v5, %v1413_v56 }
 0x10c   : > { %2710 = vst.msk [vmem:[%s4238_s25 + $0x4e8] sm:$0xff] %vm2552_vm1, %v2059_v53  ;;  %v2054_v59 = vadd.f32 %v4229_v5, %v2053_v57  ;;  %v3439_v60 = vpop.f32.mrf.mxu0  ;;  %3582 = vmatmul.mubr.msk.f32.gmra.mxu0 %vm438_vm0, %v301_v54 }
 0x10d   : > { %v3631_v61 = vpop.f32.mrf.mxu1  ;;  %3774 = vmatmul.mubr.msk.f32.gmra.mxu1 %vm438_vm0, %v429_v55  ;;  %2581 = vst.msk [vmem:[%s4238_s25 + $0xe0] sm:$0xff] %vm2552_vm1, %v1414_v58  ;;  %v1429_v62 = vadd.f32 %v3439_v60, %v4229_v5 }
 0x10e   : > { %2709 = vst.msk [vmem:[%s4238_s25 + $0x4e0] sm:$0xff] %vm2552_vm1, %v2054_v59  ;;  %v2069_v63 = vadd.f32 %v3631_v61, %v4229_v5  ;;  %v1423_v0 = vpop.f32.mrf.mxu0 }
 0x10f   : > { %v2063_v1 = vpop.f32.mrf.mxu1  ;;  %2584 = vst.msk [vmem:[%s4238_s25 + $0xf8] sm:$0xff] %vm2552_vm1, %v1429_v62  ;;  %v1424_v2 = vadd.f32 %v4229_v5, %v1423_v0 }
 0x110   : > { %2712 = vst.msk [vmem:[%s4238_s25 + $0x4f8] sm:$0xff] %vm2552_vm1, %v2069_v63  ;;  %v2064_v3 = vadd.f32 %v4229_v5, %v2063_v1  ;;  %v3442_v4 = vpop.f32.mrf.mxu0 }
 0x111   : > { %v3634_v6 = vpop.f32.mrf.mxu1  ;;  %2583 = vst.msk [vmem:[%s4238_s25 + $0xf0] sm:$0xff] %vm2552_vm1, %v1424_v2  ;;  %v1439_v7 = vadd.f32 %v3442_v4, %v4229_v5 }
 0x112   : > { %2711 = vst.msk [vmem:[%s4238_s25 + $0x4f0] sm:$0xff] %vm2552_vm1, %v2064_v3  ;;  %v2079_v8 = vadd.f32 %v3634_v6, %v4229_v5  ;;  %v1433_v9 = vpop.f32.mrf.mxu0 }
 0x113   : > { %v2073_v10 = vpop.f32.mrf.mxu1  ;;  %2586 = vst.msk [vmem:[%s4238_s25 + $0x108] sm:$0xff] %vm2552_vm1, %v1439_v7  ;;  %v1434_v11 = vadd.f32 %v4229_v5, %v1433_v9 }
 0x114   : > { %2714 = vst.msk [vmem:[%s4238_s25 + $0x508] sm:$0xff] %vm2552_vm1, %v2079_v8  ;;  %v2074_v12 = vadd.f32 %v4229_v5, %v2073_v10  ;;  %v3445_v13 = vpop.f32.mrf.mxu0 }
 0x115   : > { %v3637_v14 = vpop.f32.mrf.mxu1  ;;  %2585 = vst.msk [vmem:[%s4238_s25 + $0x100] sm:$0xff] %vm2552_vm1, %v1434_v11  ;;  %v1449_v15 = vadd.f32 %v3445_v13, %v4229_v5 }
 0x116   : > { %2713 = vst.msk [vmem:[%s4238_s25 + $0x500] sm:$0xff] %vm2552_vm1, %v2074_v12  ;;  %v2089_v16 = vadd.f32 %v3637_v14, %v4229_v5  ;;  %v1443_v17 = vpop.f32.mrf.mxu0 }
 0x117   : > { %v2083_v18 = vpop.f32.mrf.mxu1  ;;  %2588 = vst.msk [vmem:[%s4238_s25 + $0x118] sm:$0xff] %vm2552_vm1, %v1449_v15  ;;  %v1444_v19 = vadd.f32 %v4229_v5, %v1443_v17 }
 0x118   : > { %2716 = vst.msk [vmem:[%s4238_s25 + $0x518] sm:$0xff] %vm2552_vm1, %v2089_v16  ;;  %v2084_v20 = vadd.f32 %v4229_v5, %v2083_v18  ;;  %v3448_v21 = vpop.f32.mrf.mxu0 }
 0x119   : > { %v3640_v22 = vpop.f32.mrf.mxu1  ;;  %2587 = vst.msk [vmem:[%s4238_s25 + $0x110] sm:$0xff] %vm2552_vm1, %v1444_v19  ;;  %v1459_v23 = vadd.f32 %v3448_v21, %v4229_v5 }
 0x11a   : > { %2715 = vst.msk [vmem:[%s4238_s25 + $0x510] sm:$0xff] %vm2552_vm1, %v2084_v20  ;;  %v2099_v24 = vadd.f32 %v3640_v22, %v4229_v5  ;;  %v1453_v25 = vpop.f32.mrf.mxu0 }
 0x11b   : > { %v2093_v26 = vpop.f32.mrf.mxu1  ;;  %2590 = vst.msk [vmem:[%s4238_s25 + $0x128] sm:$0xff] %vm2552_vm1, %v1459_v23  ;;  %v1454_v27 = vadd.f32 %v4229_v5, %v1453_v25 }
 0x11c   : > { %2718 = vst.msk [vmem:[%s4238_s25 + $0x528] sm:$0xff] %vm2552_vm1, %v2099_v24  ;;  %v2094_v28 = vadd.f32 %v4229_v5, %v2093_v26  ;;  %v3451_v29 = vpop.f32.mrf.mxu0 }
 0x11d   : > { %v3643_v30 = vpop.f32.mrf.mxu1  ;;  %2589 = vst.msk [vmem:[%s4238_s25 + $0x120] sm:$0xff] %vm2552_vm1, %v1454_v27  ;;  %v1469_v31 = vadd.f32 %v3451_v29, %v4229_v5 }
 0x11e   : > { %2717 = vst.msk [vmem:[%s4238_s25 + $0x520] sm:$0xff] %vm2552_vm1, %v2094_v28  ;;  %v2109_v32 = vadd.f32 %v3643_v30, %v4229_v5  ;;  %v1463_v33 = vpop.f32.mrf.mxu0 }
 0x11f   : > { %v2103_v34 = vpop.f32.mrf.mxu1  ;;  %2592 = vst.msk [vmem:[%s4238_s25 + $0x138] sm:$0xff] %vm2552_vm1, %v1469_v31  ;;  %v1464_v35 = vadd.f32 %v4229_v5, %v1463_v33 }
 0x120   : > { %2720 = vst.msk [vmem:[%s4238_s25 + $0x538] sm:$0xff] %vm2552_vm1, %v2109_v32  ;;  %v2104_v36 = vadd.f32 %v4229_v5, %v2103_v34  ;;  %v3454_v37 = vpop.f32.mrf.mxu0 }
 0x121   : > { %v3646_v38 = vpop.f32.mrf.mxu1  ;;  %2591 = vst.msk [vmem:[%s4238_s25 + $0x130] sm:$0xff] %vm2552_vm1, %v1464_v35  ;;  %v1479_v39 = vadd.f32 %v3454_v37, %v4229_v5 }
 0x122   : > { %2719 = vst.msk [vmem:[%s4238_s25 + $0x530] sm:$0xff] %vm2552_vm1, %v2104_v36  ;;  %v2119_v40 = vadd.f32 %v3646_v38, %v4229_v5  ;;  %v1473_v41 = vpop.f32.mrf.mxu0 }
 0x123   : > { %v2113_v42 = vpop.f32.mrf.mxu1  ;;  %2594 = vst.msk [vmem:[%s4238_s25 + $0x148] sm:$0xff] %vm2552_vm1, %v1479_v39  ;;  %v1474_v43 = vadd.f32 %v4229_v5, %v1473_v41 }
 0x124   : > { %2722 = vst.msk [vmem:[%s4238_s25 + $0x548] sm:$0xff] %vm2552_vm1, %v2119_v40  ;;  %v2114_v44 = vadd.f32 %v4229_v5, %v2113_v42  ;;  %v3457_v45 = vpop.f32.mrf.mxu0 }
 0x125   : > { %v3649_v46 = vpop.f32.mrf.mxu1  ;;  %2593 = vst.msk [vmem:[%s4238_s25 + $0x140] sm:$0xff] %vm2552_vm1, %v1474_v43  ;;  %v1489_v47 = vadd.f32 %v3457_v45, %v4229_v5 }
 0x126   : > { %2721 = vst.msk [vmem:[%s4238_s25 + $0x540] sm:$0xff] %vm2552_vm1, %v2114_v44  ;;  %v2129_v48 = vadd.f32 %v3649_v46, %v4229_v5  ;;  %v1483_v49 = vpop.f32.mrf.mxu0 }
 0x127   : > { %v2123_v50 = vpop.f32.mrf.mxu1  ;;  %2596 = vst.msk [vmem:[%s4238_s25 + $0x158] sm:$0xff] %vm2552_vm1, %v1489_v47  ;;  %v1484_v51 = vadd.f32 %v4229_v5, %v1483_v49 }
 0x128   : > { %2724 = vst.msk [vmem:[%s4238_s25 + $0x558] sm:$0xff] %vm2552_vm1, %v2129_v48  ;;  %v2124_v52 = vadd.f32 %v4229_v5, %v2123_v50  ;;  %v3460_v53 = vpop.f32.mrf.mxu0 }
 0x129   : > { %v3652_v54 = vpop.f32.mrf.mxu1  ;;  %2595 = vst.msk [vmem:[%s4238_s25 + $0x150] sm:$0xff] %vm2552_vm1, %v1484_v51  ;;  %v1499_v55 = vadd.f32 %v3460_v53, %v4229_v5 }
 0x12a   : > { %2723 = vst.msk [vmem:[%s4238_s25 + $0x550] sm:$0xff] %vm2552_vm1, %v2124_v52  ;;  %v2139_v56 = vadd.f32 %v3652_v54, %v4229_v5  ;;  %v1493_v57 = vpop.f32.mrf.mxu0 }
 0x12b   : > { %v2133_v58 = vpop.f32.mrf.mxu1  ;;  %2598 = vst.msk [vmem:[%s4238_s25 + $0x168] sm:$0xff] %vm2552_vm1, %v1499_v55  ;;  %v1494_v59 = vadd.f32 %v4229_v5, %v1493_v57 }
 0x12c   : > { %2726 = vst.msk [vmem:[%s4238_s25 + $0x568] sm:$0xff] %vm2552_vm1, %v2139_v56  ;;  %v2134_v60 = vadd.f32 %v4229_v5, %v2133_v58  ;;  %v3463_v61 = vpop.f32.mrf.mxu0 }
 0x12d   : > { %v3655_v62 = vpop.f32.mrf.mxu1  ;;  %2597 = vst.msk [vmem:[%s4238_s25 + $0x160] sm:$0xff] %vm2552_vm1, %v1494_v59  ;;  %v1509_v63 = vadd.f32 %v3463_v61, %v4229_v5 }
 0x12e   : > { %2725 = vst.msk [vmem:[%s4238_s25 + $0x560] sm:$0xff] %vm2552_vm1, %v2134_v60  ;;  %v2149_v0 = vadd.f32 %v3655_v62, %v4229_v5  ;;  %v1503_v1 = vpop.f32.mrf.mxu0 }
 0x12f   : > { %v2143_v2 = vpop.f32.mrf.mxu1  ;;  %2600 = vst.msk [vmem:[%s4238_s25 + $0x178] sm:$0xff] %vm2552_vm1, %v1509_v63  ;;  %v1504_v3 = vadd.f32 %v4229_v5, %v1503_v1 }
 0x130   : > { %2728 = vst.msk [vmem:[%s4238_s25 + $0x578] sm:$0xff] %vm2552_vm1, %v2149_v0  ;;  %v2144_v4 = vadd.f32 %v4229_v5, %v2143_v2  ;;  %v3466_v6 = vpop.f32.mrf.mxu0 }
 0x131   : > { %v3658_v7 = vpop.f32.mrf.mxu1  ;;  %2599 = vst.msk [vmem:[%s4238_s25 + $0x170] sm:$0xff] %vm2552_vm1, %v1504_v3  ;;  %v1519_v8 = vadd.f32 %v3466_v6, %v4229_v5 }
 0x132   : > { %2727 = vst.msk [vmem:[%s4238_s25 + $0x570] sm:$0xff] %vm2552_vm1, %v2144_v4  ;;  %v2159_v9 = vadd.f32 %v3658_v7, %v4229_v5  ;;  %v1513_v10 = vpop.f32.mrf.mxu0 }
 0x133   : > { %v2153_v11 = vpop.f32.mrf.mxu1  ;;  %2602 = vst.msk [vmem:[%s4238_s25 + $0x188] sm:$0xff] %vm2552_vm1, %v1519_v8  ;;  %v1514_v12 = vadd.f32 %v4229_v5, %v1513_v10  ;;  %v4748_v10 = vld [vmem:[%s5138_s2] ss:$0 sm:$0xff] }
 0x134   : > { %2730 = vst.msk [vmem:[%s4238_s25 + $0x588] sm:$0xff] %vm2552_vm1, %v2159_v9  ;;  %v2154_v13 = vadd.f32 %v4229_v5, %v2153_v11  ;;  %v3469_v14 = vpop.f32.mrf.mxu0 }
 0x135   : > { %v3661_v15 = vpop.f32.mrf.mxu1  ;;  %2601 = vst.msk [vmem:[%s4238_s25 + $0x180] sm:$0xff] %vm2552_vm1, %v1514_v12  ;;  %v1529_v16 = vadd.f32 %v3469_v14, %v4229_v5 }
 0x136   : > { %2729 = vst.msk [vmem:[%s4238_s25 + $0x580] sm:$0xff] %vm2552_vm1, %v2154_v13  ;;  %v2169_v17 = vadd.f32 %v3661_v15, %v4229_v5  ;;  %v1523_v18 = vpop.f32.mrf.mxu0 }
 0x137   : > { %v2163_v19 = vpop.f32.mrf.mxu1  ;;  %2604 = vst.msk [vmem:[%s4238_s25 + $0x198] sm:$0xff] %vm2552_vm1, %v1529_v16  ;;  %v1524_v20 = vadd.f32 %v4229_v5, %v1523_v18 }
 0x138   : > { %2732 = vst.msk [vmem:[%s4238_s25 + $0x598] sm:$0xff] %vm2552_vm1, %v2169_v17  ;;  %v2164_v21 = vadd.f32 %v4229_v5, %v2163_v19  ;;  %v3472_v22 = vpop.f32.mrf.mxu0 }
 0x139   : > { %v3664_v23 = vpop.f32.mrf.mxu1  ;;  %2603 = vst.msk [vmem:[%s4238_s25 + $0x190] sm:$0xff] %vm2552_vm1, %v1524_v20  ;;  %v1539_v24 = vadd.f32 %v3472_v22, %v4229_v5 }
 0x13a   : > { %2731 = vst.msk [vmem:[%s4238_s25 + $0x590] sm:$0xff] %vm2552_vm1, %v2164_v21  ;;  %v2179_v25 = vadd.f32 %v3664_v23, %v4229_v5  ;;  %v1533_v26 = vpop.f32.mrf.mxu0 }
 0x13b   : > { %v2173_v27 = vpop.f32.mrf.mxu1  ;;  %2606 = vst.msk [vmem:[%s4238_s25 + $0x1a8] sm:$0xff] %vm2552_vm1, %v1539_v24  ;;  %v1534_v28 = vadd.f32 %v4229_v5, %v1533_v26 }
 0x13c   : > { %2734 = vst.msk [vmem:[%s4238_s25 + $0x5a8] sm:$0xff] %vm2552_vm1, %v2179_v25  ;;  %v2174_v29 = vadd.f32 %v4229_v5, %v2173_v27  ;;  %v3475_v30 = vpop.f32.mrf.mxu0 }
 0x13d   : > { %v3667_v31 = vpop.f32.mrf.mxu1  ;;  %2605 = vst.msk [vmem:[%s4238_s25 + $0x1a0] sm:$0xff] %vm2552_vm1, %v1534_v28  ;;  %v1549_v32 = vadd.f32 %v3475_v30, %v4229_v5 }
 0x13e   : > { %2733 = vst.msk [vmem:[%s4238_s25 + $0x5a0] sm:$0xff] %vm2552_vm1, %v2174_v29  ;;  %v2189_v33 = vadd.f32 %v3667_v31, %v4229_v5  ;;  %v1543_v34 = vpop.f32.mrf.mxu0 }
 0x13f   : > { %v2183_v35 = vpop.f32.mrf.mxu1  ;;  %2608 = vst.msk [vmem:[%s4238_s25 + $0x1b8] sm:$0xff] %vm2552_vm1, %v1549_v32  ;;  %v1544_v36 = vadd.f32 %v4229_v5, %v1543_v34 }
 0x140   : > { %2736 = vst.msk [vmem:[%s4238_s25 + $0x5b8] sm:$0xff] %vm2552_vm1, %v2189_v33  ;;  %v2184_v37 = vadd.f32 %v4229_v5, %v2183_v35  ;;  %v3478_v38 = vpop.f32.mrf.mxu0 }
 0x141   : > { %v3670_v39 = vpop.f32.mrf.mxu1  ;;  %2607 = vst.msk [vmem:[%s4238_s25 + $0x1b0] sm:$0xff] %vm2552_vm1, %v1544_v36  ;;  %v1559_v40 = vadd.f32 %v3478_v38, %v4229_v5 }
 0x142   : > { %2735 = vst.msk [vmem:[%s4238_s25 + $0x5b0] sm:$0xff] %vm2552_vm1, %v2184_v37  ;;  %v2199_v41 = vadd.f32 %v3670_v39, %v4229_v5  ;;  %v1553_v42 = vpop.f32.mrf.mxu0 }
 0x143   : > { %v2193_v43 = vpop.f32.mrf.mxu1  ;;  %2610 = vst.msk [vmem:[%s4238_s25 + $0x1c8] sm:$0xff] %vm2552_vm1, %v1559_v40  ;;  %v1554_v44 = vadd.f32 %v4229_v5, %v1553_v42 }
 0x144   : > { %2738 = vst.msk [vmem:[%s4238_s25 + $0x5c8] sm:$0xff] %vm2552_vm1, %v2199_v41  ;;  %v2194_v45 = vadd.f32 %v4229_v5, %v2193_v43  ;;  %v3481_v46 = vpop.f32.mrf.mxu0 }
 0x145   : > { %v3673_v47 = vpop.f32.mrf.mxu1  ;;  %2609 = vst.msk [vmem:[%s4238_s25 + $0x1c0] sm:$0xff] %vm2552_vm1, %v1554_v44  ;;  %v1569_v48 = vadd.f32 %v3481_v46, %v4229_v5 }
 0x146   : > { %2737 = vst.msk [vmem:[%s4238_s25 + $0x5c0] sm:$0xff] %vm2552_vm1, %v2194_v45  ;;  %v2209_v49 = vadd.f32 %v3673_v47, %v4229_v5  ;;  %v1563_v50 = vpop.f32.mrf.mxu0 }
 0x147   : > { %v2203_v51 = vpop.f32.mrf.mxu1  ;;  %2612 = vst.msk [vmem:[%s4238_s25 + $0x1d8] sm:$0xff] %vm2552_vm1, %v1569_v48  ;;  %v1564_v52 = vadd.f32 %v4229_v5, %v1563_v50 }
 0x148   : > { %2740 = vst.msk [vmem:[%s4238_s25 + $0x5d8] sm:$0xff] %vm2552_vm1, %v2209_v49  ;;  %v2204_v53 = vadd.f32 %v4229_v5, %v2203_v51  ;;  %v3484_v54 = vpop.f32.mrf.mxu0 }
 0x149   : > { %v3676_v55 = vpop.f32.mrf.mxu1  ;;  %2611 = vst.msk [vmem:[%s4238_s25 + $0x1d0] sm:$0xff] %vm2552_vm1, %v1564_v52  ;;  %v1579_v56 = vadd.f32 %v3484_v54, %v4229_v5 }
 0x14a   : > { %2739 = vst.msk [vmem:[%s4238_s25 + $0x5d0] sm:$0xff] %vm2552_vm1, %v2204_v53  ;;  %v2219_v57 = vadd.f32 %v3676_v55, %v4229_v5  ;;  %v1573_v58 = vpop.f32.mrf.mxu0 }
 0x14b   : > { %v2213_v59 = vpop.f32.mrf.mxu1  ;;  %2614 = vst.msk [vmem:[%s4238_s25 + $0x1e8] sm:$0xff] %vm2552_vm1, %v1579_v56  ;;  %v1574_v60 = vadd.f32 %v4229_v5, %v1573_v58 }
 0x14c   : > { %2742 = vst.msk [vmem:[%s4238_s25 + $0x5e8] sm:$0xff] %vm2552_vm1, %v2219_v57  ;;  %v2214_v61 = vadd.f32 %v4229_v5, %v2213_v59  ;;  %v3487_v62 = vpop.f32.mrf.mxu0 }
 0x14d   : > { %v3679_v63 = vpop.f32.mrf.mxu1  ;;  %2613 = vst.msk [vmem:[%s4238_s25 + $0x1e0] sm:$0xff] %vm2552_vm1, %v1574_v60  ;;  %v1589_v0 = vadd.f32 %v3487_v62, %v4229_v5 }
 0x14e   : > { %2741 = vst.msk [vmem:[%s4238_s25 + $0x5e0] sm:$0xff] %vm2552_vm1, %v2214_v61  ;;  %v2229_v1 = vadd.f32 %v3679_v63, %v4229_v5  ;;  %v1583_v2 = vpop.f32.mrf.mxu0 }
 0x14f   : > { %v2223_v3 = vpop.f32.mrf.mxu1  ;;  %2616 = vst.msk [vmem:[%s4238_s25 + $0x1f8] sm:$0xff] %vm2552_vm1, %v1589_v0  ;;  %v1584_v4 = vadd.f32 %v4229_v5, %v1583_v2 }
 0x150   : > { %2744 = vst.msk [vmem:[%s4238_s25 + $0x5f8] sm:$0xff] %vm2552_vm1, %v2229_v1  ;;  %v2224_v6 = vadd.f32 %v4229_v5, %v2223_v3  ;;  %v3490_v7 = vpop.f32.mrf.mxu0 }
 0x151   : > { %v3682_v8 = vpop.f32.mrf.mxu1  ;;  %2615 = vst.msk [vmem:[%s4238_s25 + $0x1f0] sm:$0xff] %vm2552_vm1, %v1584_v4  ;;  %v1599_v9 = vadd.f32 %v3490_v7, %v4229_v5 }
 0x152   : > { %2743 = vst.msk [vmem:[%s4238_s25 + $0x5f0] sm:$0xff] %vm2552_vm1, %v2224_v6  ;;  %v2239_v11 = vadd.f32 %v4748_v10, %v3682_v8  ;;  %v1593_v12 = vpop.f32.mrf.mxu0 }
 0x153   : > { %v2233_v13 = vpop.f32.mrf.mxu1  ;;  %2618 = vst.msk [vmem:[%s4238_s25 + $0x208] sm:$0xff] %vm2552_vm1, %v1599_v9  ;;  %v1594_v14 = vadd.f32 %v4748_v10, %v1593_v12 }
 0x154   : > { %2746 = vst.msk [vmem:[%s4238_s25 + $0x608] sm:$0xff] %vm2552_vm1, %v2239_v11  ;;  %v2234_v5 = vadd.f32 %v4748_v10, %v2233_v13  ;;  %v3493_v15 = vpop.f32.mrf.mxu0 }
 0x155   : > { %v3685_v16 = vpop.f32.mrf.mxu1  ;;  %2617 = vst.msk [vmem:[%s4238_s25 + $0x200] sm:$0xff] %vm2552_vm1, %v1594_v14  ;;  %v1609_v17 = vadd.f32 %v4748_v10, %v3493_v15 }
 0x156   : > { %2745 = vst.msk [vmem:[%s4238_s25 + $0x600] sm:$0xff] %vm2552_vm1, %v2234_v5  ;;  %v2249_v18 = vadd.f32 %v4748_v10, %v3685_v16  ;;  %v1603_v19 = vpop.f32.mrf.mxu0 }
 0x157   : > { %v2243_v20 = vpop.f32.mrf.mxu1  ;;  %2620 = vst.msk [vmem:[%s4238_s25 + $0x218] sm:$0xff] %vm2552_vm1, %v1609_v17  ;;  %v1604_v21 = vadd.f32 %v4748_v10, %v1603_v19 }
 0x158   : > { %2748 = vst.msk [vmem:[%s4238_s25 + $0x618] sm:$0xff] %vm2552_vm1, %v2249_v18  ;;  %v2244_v22 = vadd.f32 %v4748_v10, %v2243_v20  ;;  %v3496_v23 = vpop.f32.mrf.mxu0 }
 0x159   : > { %v3688_v24 = vpop.f32.mrf.mxu1  ;;  %2619 = vst.msk [vmem:[%s4238_s25 + $0x210] sm:$0xff] %vm2552_vm1, %v1604_v21  ;;  %v1619_v25 = vadd.f32 %v4748_v10, %v3496_v23 }
 0x15a   : > { %2747 = vst.msk [vmem:[%s4238_s25 + $0x610] sm:$0xff] %vm2552_vm1, %v2244_v22  ;;  %v2259_v26 = vadd.f32 %v4748_v10, %v3688_v24  ;;  %v1613_v27 = vpop.f32.mrf.mxu0 }
 0x15b   : > { %v2253_v28 = vpop.f32.mrf.mxu1  ;;  %2622 = vst.msk [vmem:[%s4238_s25 + $0x228] sm:$0xff] %vm2552_vm1, %v1619_v25  ;;  %v1614_v29 = vadd.f32 %v4748_v10, %v1613_v27 }
 0x15c   : > { %2750 = vst.msk [vmem:[%s4238_s25 + $0x628] sm:$0xff] %vm2552_vm1, %v2259_v26  ;;  %v2254_v30 = vadd.f32 %v4748_v10, %v2253_v28  ;;  %v3499_v31 = vpop.f32.mrf.mxu0 }
 0x15d   : > { %v3691_v32 = vpop.f32.mrf.mxu1  ;;  %2621 = vst.msk [vmem:[%s4238_s25 + $0x220] sm:$0xff] %vm2552_vm1, %v1614_v29  ;;  %v1629_v33 = vadd.f32 %v4748_v10, %v3499_v31 }
 0x15e   : > { %2749 = vst.msk [vmem:[%s4238_s25 + $0x620] sm:$0xff] %vm2552_vm1, %v2254_v30  ;;  %v2269_v34 = vadd.f32 %v4748_v10, %v3691_v32  ;;  %v1623_v35 = vpop.f32.mrf.mxu0 }
 0x15f   : > { %v2263_v36 = vpop.f32.mrf.mxu1  ;;  %2624 = vst.msk [vmem:[%s4238_s25 + $0x238] sm:$0xff] %vm2552_vm1, %v1629_v33  ;;  %v1624_v37 = vadd.f32 %v4748_v10, %v1623_v35 }
 0x160   : > { %2752 = vst.msk [vmem:[%s4238_s25 + $0x638] sm:$0xff] %vm2552_vm1, %v2269_v34  ;;  %v2264_v38 = vadd.f32 %v4748_v10, %v2263_v36  ;;  %v3502_v39 = vpop.f32.mrf.mxu0 }
 0x161   : > { %v3694_v40 = vpop.f32.mrf.mxu1  ;;  %2623 = vst.msk [vmem:[%s4238_s25 + $0x230] sm:$0xff] %vm2552_vm1, %v1624_v37  ;;  %v1639_v41 = vadd.f32 %v4748_v10, %v3502_v39 }
 0x162   : > { %2751 = vst.msk [vmem:[%s4238_s25 + $0x630] sm:$0xff] %vm2552_vm1, %v2264_v38  ;;  %v2279_v42 = vadd.f32 %v4748_v10, %v3694_v40  ;;  %v1633_v43 = vpop.f32.mrf.mxu0 }
 0x163   : > { %v2273_v44 = vpop.f32.mrf.mxu1  ;;  %2626 = vst.msk [vmem:[%s4238_s25 + $0x248] sm:$0xff] %vm2552_vm1, %v1639_v41  ;;  %v1634_v45 = vadd.f32 %v4748_v10, %v1633_v43 }
 0x164   : > { %2754 = vst.msk [vmem:[%s4238_s25 + $0x648] sm:$0xff] %vm2552_vm1, %v2279_v42  ;;  %v2274_v46 = vadd.f32 %v4748_v10, %v2273_v44  ;;  %v3505_v47 = vpop.f32.mrf.mxu0 }
 0x165   : > { %v3697_v48 = vpop.f32.mrf.mxu1  ;;  %2625 = vst.msk [vmem:[%s4238_s25 + $0x240] sm:$0xff] %vm2552_vm1, %v1634_v45  ;;  %v1649_v49 = vadd.f32 %v4748_v10, %v3505_v47 }
 0x166   : > { %2753 = vst.msk [vmem:[%s4238_s25 + $0x640] sm:$0xff] %vm2552_vm1, %v2274_v46  ;;  %v2289_v50 = vadd.f32 %v4748_v10, %v3697_v48  ;;  %v1643_v51 = vpop.f32.mrf.mxu0 }
 0x167   : > { %v2283_v52 = vpop.f32.mrf.mxu1  ;;  %2628 = vst.msk [vmem:[%s4238_s25 + $0x258] sm:$0xff] %vm2552_vm1, %v1649_v49  ;;  %v1644_v53 = vadd.f32 %v4748_v10, %v1643_v51 }
 0x168   : > { %2756 = vst.msk [vmem:[%s4238_s25 + $0x658] sm:$0xff] %vm2552_vm1, %v2289_v50  ;;  %v2284_v54 = vadd.f32 %v4748_v10, %v2283_v52  ;;  %v3508_v55 = vpop.f32.mrf.mxu0 }
 0x169   : > { %v3700_v56 = vpop.f32.mrf.mxu1  ;;  %2627 = vst.msk [vmem:[%s4238_s25 + $0x250] sm:$0xff] %vm2552_vm1, %v1644_v53  ;;  %v1659_v57 = vadd.f32 %v4748_v10, %v3508_v55 }
 0x16a   : > { %2755 = vst.msk [vmem:[%s4238_s25 + $0x650] sm:$0xff] %vm2552_vm1, %v2284_v54  ;;  %v2299_v58 = vadd.f32 %v4748_v10, %v3700_v56  ;;  %v1653_v59 = vpop.f32.mrf.mxu0 }
 0x16b   : > { %v2293_v60 = vpop.f32.mrf.mxu1  ;;  %2630 = vst.msk [vmem:[%s4238_s25 + $0x268] sm:$0xff] %vm2552_vm1, %v1659_v57  ;;  %v1654_v61 = vadd.f32 %v4748_v10, %v1653_v59 }
 0x16c   : > { %2758 = vst.msk [vmem:[%s4238_s25 + $0x668] sm:$0xff] %vm2552_vm1, %v2299_v58  ;;  %v2294_v62 = vadd.f32 %v4748_v10, %v2293_v60  ;;  %v3511_v63 = vpop.f32.mrf.mxu0 }
 0x16d   : > { %v3703_v0 = vpop.f32.mrf.mxu1  ;;  %2629 = vst.msk [vmem:[%s4238_s25 + $0x260] sm:$0xff] %vm2552_vm1, %v1654_v61  ;;  %v1669_v1 = vadd.f32 %v4748_v10, %v3511_v63 }
 0x16e   : > { %2757 = vst.msk [vmem:[%s4238_s25 + $0x660] sm:$0xff] %vm2552_vm1, %v2294_v62  ;;  %v2309_v2 = vadd.f32 %v4748_v10, %v3703_v0  ;;  %v1663_v3 = vpop.f32.mrf.mxu0 }
 0x16f   : > { %v2303_v4 = vpop.f32.mrf.mxu1  ;;  %2632 = vst.msk [vmem:[%s4238_s25 + $0x278] sm:$0xff] %vm2552_vm1, %v1669_v1  ;;  %v1664_v6 = vadd.f32 %v4748_v10, %v1663_v3 }
 0x170   : > { %2760 = vst.msk [vmem:[%s4238_s25 + $0x678] sm:$0xff] %vm2552_vm1, %v2309_v2  ;;  %v2304_v7 = vadd.f32 %v4748_v10, %v2303_v4  ;;  %v3514_v8 = vpop.f32.mrf.mxu0 }
 0x171   : > { %v3706_v9 = vpop.f32.mrf.mxu1  ;;  %2631 = vst.msk [vmem:[%s4238_s25 + $0x270] sm:$0xff] %vm2552_vm1, %v1664_v6  ;;  %v1679_v11 = vadd.f32 %v4748_v10, %v3514_v8 }
 0x172   : > { %2759 = vst.msk [vmem:[%s4238_s25 + $0x670] sm:$0xff] %vm2552_vm1, %v2304_v7  ;;  %v2319_v12 = vadd.f32 %v4748_v10, %v3706_v9  ;;  %v1673_v13 = vpop.f32.mrf.mxu0 }
 0x173   : > { %v2313_v14 = vpop.f32.mrf.mxu1  ;;  %2634 = vst.msk [vmem:[%s4238_s25 + $0x288] sm:$0xff] %vm2552_vm1, %v1679_v11  ;;  %v1674_v5 = vadd.f32 %v4748_v10, %v1673_v13 }
 0x174   : > { %2762 = vst.msk [vmem:[%s4238_s25 + $0x688] sm:$0xff] %vm2552_vm1, %v2319_v12  ;;  %v2314_v15 = vadd.f32 %v4748_v10, %v2313_v14  ;;  %v3517_v16 = vpop.f32.mrf.mxu0 }
 0x175   : > { %v3709_v17 = vpop.f32.mrf.mxu1  ;;  %2633 = vst.msk [vmem:[%s4238_s25 + $0x280] sm:$0xff] %vm2552_vm1, %v1674_v5  ;;  %v1689_v18 = vadd.f32 %v4748_v10, %v3517_v16 }
 0x176   : > { %2761 = vst.msk [vmem:[%s4238_s25 + $0x680] sm:$0xff] %vm2552_vm1, %v2314_v15  ;;  %v2329_v19 = vadd.f32 %v4748_v10, %v3709_v17  ;;  %v1683_v20 = vpop.f32.mrf.mxu0 }
 0x177   : > { %v2323_v21 = vpop.f32.mrf.mxu1  ;;  %2636 = vst.msk [vmem:[%s4238_s25 + $0x298] sm:$0xff] %vm2552_vm1, %v1689_v18  ;;  %v1684_v22 = vadd.f32 %v4748_v10, %v1683_v20 }
 0x178   : > { %2764 = vst.msk [vmem:[%s4238_s25 + $0x698] sm:$0xff] %vm2552_vm1, %v2329_v19  ;;  %v2324_v23 = vadd.f32 %v4748_v10, %v2323_v21  ;;  %v3520_v24 = vpop.f32.mrf.mxu0 }
 0x179   : > { %v3712_v25 = vpop.f32.mrf.mxu1  ;;  %2635 = vst.msk [vmem:[%s4238_s25 + $0x290] sm:$0xff] %vm2552_vm1, %v1684_v22  ;;  %v1699_v26 = vadd.f32 %v4748_v10, %v3520_v24 }
 0x17a   : > { %2763 = vst.msk [vmem:[%s4238_s25 + $0x690] sm:$0xff] %vm2552_vm1, %v2324_v23  ;;  %v2339_v27 = vadd.f32 %v4748_v10, %v3712_v25  ;;  %v1693_v28 = vpop.f32.mrf.mxu0 }
 0x17b   : > { %v2333_v29 = vpop.f32.mrf.mxu1  ;;  %2638 = vst.msk [vmem:[%s4238_s25 + $0x2a8] sm:$0xff] %vm2552_vm1, %v1699_v26  ;;  %v1694_v30 = vadd.f32 %v4748_v10, %v1693_v28 }
 0x17c   : > { %2766 = vst.msk [vmem:[%s4238_s25 + $0x6a8] sm:$0xff] %vm2552_vm1, %v2339_v27  ;;  %v2334_v31 = vadd.f32 %v4748_v10, %v2333_v29  ;;  %v3523_v32 = vpop.f32.mrf.mxu0 }
 0x17d   : > { %v3715_v33 = vpop.f32.mrf.mxu1  ;;  %2637 = vst.msk [vmem:[%s4238_s25 + $0x2a0] sm:$0xff] %vm2552_vm1, %v1694_v30  ;;  %v1709_v34 = vadd.f32 %v4748_v10, %v3523_v32 }
 0x17e   : > { %2765 = vst.msk [vmem:[%s4238_s25 + $0x6a0] sm:$0xff] %vm2552_vm1, %v2334_v31  ;;  %v2349_v35 = vadd.f32 %v4748_v10, %v3715_v33  ;;  %v1703_v36 = vpop.f32.mrf.mxu0 }
 0x17f   : > { %v2343_v37 = vpop.f32.mrf.mxu1  ;;  %2640 = vst.msk [vmem:[%s4238_s25 + $0x2b8] sm:$0xff] %vm2552_vm1, %v1709_v34  ;;  %v1704_v38 = vadd.f32 %v4748_v10, %v1703_v36 }
 0x180   : > { %2768 = vst.msk [vmem:[%s4238_s25 + $0x6b8] sm:$0xff] %vm2552_vm1, %v2349_v35  ;;  %v2344_v39 = vadd.f32 %v4748_v10, %v2343_v37  ;;  %v3526_v40 = vpop.f32.mrf.mxu0 }
 0x181   : > { %v3718_v41 = vpop.f32.mrf.mxu1  ;;  %2639 = vst.msk [vmem:[%s4238_s25 + $0x2b0] sm:$0xff] %vm2552_vm1, %v1704_v38  ;;  %v1719_v42 = vadd.f32 %v4748_v10, %v3526_v40 }
 0x182   : > { %2767 = vst.msk [vmem:[%s4238_s25 + $0x6b0] sm:$0xff] %vm2552_vm1, %v2344_v39  ;;  %v2359_v43 = vadd.f32 %v4748_v10, %v3718_v41  ;;  %v1713_v44 = vpop.f32.mrf.mxu0 }
 0x183   : > { %v2353_v45 = vpop.f32.mrf.mxu1  ;;  %2642 = vst.msk [vmem:[%s4238_s25 + $0x2c8] sm:$0xff] %vm2552_vm1, %v1719_v42  ;;  %v1714_v46 = vadd.f32 %v4748_v10, %v1713_v44 }
 0x184   : > { %2770 = vst.msk [vmem:[%s4238_s25 + $0x6c8] sm:$0xff] %vm2552_vm1, %v2359_v43  ;;  %v2354_v47 = vadd.f32 %v4748_v10, %v2353_v45  ;;  %v3529_v48 = vpop.f32.mrf.mxu0 }
 0x185   : > { %v3721_v49 = vpop.f32.mrf.mxu1  ;;  %2641 = vst.msk [vmem:[%s4238_s25 + $0x2c0] sm:$0xff] %vm2552_vm1, %v1714_v46  ;;  %v1729_v50 = vadd.f32 %v4748_v10, %v3529_v48 }
 0x186   : > { %2769 = vst.msk [vmem:[%s4238_s25 + $0x6c0] sm:$0xff] %vm2552_vm1, %v2354_v47  ;;  %v2369_v51 = vadd.f32 %v4748_v10, %v3721_v49  ;;  %v1723_v52 = vpop.f32.mrf.mxu0 }
 0x187   : > { %v2363_v53 = vpop.f32.mrf.mxu1  ;;  %2644 = vst.msk [vmem:[%s4238_s25 + $0x2d8] sm:$0xff] %vm2552_vm1, %v1729_v50  ;;  %v1724_v54 = vadd.f32 %v4748_v10, %v1723_v52 }
 0x188   : > { %2772 = vst.msk [vmem:[%s4238_s25 + $0x6d8] sm:$0xff] %vm2552_vm1, %v2369_v51  ;;  %v2364_v55 = vadd.f32 %v4748_v10, %v2363_v53  ;;  %v3532_v56 = vpop.f32.mrf.mxu0 }
 0x189   : > { %v3724_v57 = vpop.f32.mrf.mxu1  ;;  %2643 = vst.msk [vmem:[%s4238_s25 + $0x2d0] sm:$0xff] %vm2552_vm1, %v1724_v54  ;;  %v1739_v58 = vadd.f32 %v4748_v10, %v3532_v56 }
 0x18a   : > { %2771 = vst.msk [vmem:[%s4238_s25 + $0x6d0] sm:$0xff] %vm2552_vm1, %v2364_v55  ;;  %v2379_v59 = vadd.f32 %v4748_v10, %v3724_v57  ;;  %v1733_v60 = vpop.f32.mrf.mxu0 }
 0x18b   : > { %v2373_v61 = vpop.f32.mrf.mxu1  ;;  %2646 = vst.msk [vmem:[%s4238_s25 + $0x2e8] sm:$0xff] %vm2552_vm1, %v1739_v58  ;;  %v1734_v62 = vadd.f32 %v4748_v10, %v1733_v60 }
 0x18c   : > { %2774 = vst.msk [vmem:[%s4238_s25 + $0x6e8] sm:$0xff] %vm2552_vm1, %v2379_v59  ;;  %v2374_v63 = vadd.f32 %v4748_v10, %v2373_v61  ;;  %v3535_v0 = vpop.f32.mrf.mxu0 }
 0x18d   : > { %v3727_v1 = vpop.f32.mrf.mxu1  ;;  %2645 = vst.msk [vmem:[%s4238_s25 + $0x2e0] sm:$0xff] %vm2552_vm1, %v1734_v62  ;;  %v1749_v2 = vadd.f32 %v4748_v10, %v3535_v0 }
 0x18e   : > { %2773 = vst.msk [vmem:[%s4238_s25 + $0x6e0] sm:$0xff] %vm2552_vm1, %v2374_v63  ;;  %v2389_v3 = vadd.f32 %v4748_v10, %v3727_v1  ;;  %v1743_v4 = vpop.f32.mrf.mxu0 }
 0x18f   : > { %v2383_v6 = vpop.f32.mrf.mxu1  ;;  %2648 = vst.msk [vmem:[%s4238_s25 + $0x2f8] sm:$0xff] %vm2552_vm1, %v1749_v2  ;;  %v1744_v7 = vadd.f32 %v4748_v10, %v1743_v4 }
 0x190   : > { %2776 = vst.msk [vmem:[%s4238_s25 + $0x6f8] sm:$0xff] %vm2552_vm1, %v2389_v3  ;;  %v2384_v8 = vadd.f32 %v4748_v10, %v2383_v6  ;;  %v3538_v9 = vpop.f32.mrf.mxu0 }
 0x191   : > { %v3730_v11 = vpop.f32.mrf.mxu1  ;;  %2647 = vst.msk [vmem:[%s4238_s25 + $0x2f0] sm:$0xff] %vm2552_vm1, %v1744_v7  ;;  %v1759_v12 = vadd.f32 %v4748_v10, %v3538_v9 }
 0x192   : > { %2775 = vst.msk [vmem:[%s4238_s25 + $0x6f0] sm:$0xff] %vm2552_vm1, %v2384_v8  ;;  %v2399_v13 = vadd.f32 %v4748_v10, %v3730_v11  ;;  %v1753_v14 = vpop.f32.mrf.mxu0 }
 0x193   : > { %v2393_v5 = vpop.f32.mrf.mxu1  ;;  %2650 = vst.msk [vmem:[%s4238_s25 + $0x308] sm:$0xff] %vm2552_vm1, %v1759_v12  ;;  %v1754_v15 = vadd.f32 %v4748_v10, %v1753_v14 }
 0x194   : > { %2778 = vst.msk [vmem:[%s4238_s25 + $0x708] sm:$0xff] %vm2552_vm1, %v2399_v13  ;;  %v2394_v16 = vadd.f32 %v4748_v10, %v2393_v5  ;;  %v3541_v17 = vpop.f32.mrf.mxu0 }
 0x195   : > { %v3733_v18 = vpop.f32.mrf.mxu1  ;;  %2649 = vst.msk [vmem:[%s4238_s25 + $0x300] sm:$0xff] %vm2552_vm1, %v1754_v15  ;;  %v1769_v19 = vadd.f32 %v4748_v10, %v3541_v17 }
 0x196   : > { %2777 = vst.msk [vmem:[%s4238_s25 + $0x700] sm:$0xff] %vm2552_vm1, %v2394_v16  ;;  %v2409_v20 = vadd.f32 %v4748_v10, %v3733_v18  ;;  %v1763_v21 = vpop.f32.mrf.mxu0 }
 0x197   : > { %v2403_v22 = vpop.f32.mrf.mxu1  ;;  %2652 = vst.msk [vmem:[%s4238_s25 + $0x318] sm:$0xff] %vm2552_vm1, %v1769_v19  ;;  %v1764_v23 = vadd.f32 %v4748_v10, %v1763_v21 }
 0x198   : > { %2780 = vst.msk [vmem:[%s4238_s25 + $0x718] sm:$0xff] %vm2552_vm1, %v2409_v20  ;;  %v2404_v24 = vadd.f32 %v4748_v10, %v2403_v22  ;;  %v3544_v25 = vpop.f32.mrf.mxu0 }
 0x199   : > { %v3736_v26 = vpop.f32.mrf.mxu1  ;;  %2651 = vst.msk [vmem:[%s4238_s25 + $0x310] sm:$0xff] %vm2552_vm1, %v1764_v23  ;;  %v1779_v27 = vadd.f32 %v4748_v10, %v3544_v25 }
 0x19a   : > { %2779 = vst.msk [vmem:[%s4238_s25 + $0x710] sm:$0xff] %vm2552_vm1, %v2404_v24  ;;  %v2419_v28 = vadd.f32 %v4748_v10, %v3736_v26  ;;  %v1773_v29 = vpop.f32.mrf.mxu0 }
 0x19b   : > { %v2413_v30 = vpop.f32.mrf.mxu1  ;;  %2654 = vst.msk [vmem:[%s4238_s25 + $0x328] sm:$0xff] %vm2552_vm1, %v1779_v27  ;;  %v1774_v31 = vadd.f32 %v4748_v10, %v1773_v29 }
 0x19c   : > { %2782 = vst.msk [vmem:[%s4238_s25 + $0x728] sm:$0xff] %vm2552_vm1, %v2419_v28  ;;  %v2414_v32 = vadd.f32 %v4748_v10, %v2413_v30  ;;  %v3547_v33 = vpop.f32.mrf.mxu0 }
 0x19d   : > { %v3739_v34 = vpop.f32.mrf.mxu1  ;;  %2653 = vst.msk [vmem:[%s4238_s25 + $0x320] sm:$0xff] %vm2552_vm1, %v1774_v31  ;;  %v1789_v35 = vadd.f32 %v4748_v10, %v3547_v33 }
 0x19e   : > { %2781 = vst.msk [vmem:[%s4238_s25 + $0x720] sm:$0xff] %vm2552_vm1, %v2414_v32  ;;  %v2429_v36 = vadd.f32 %v4748_v10, %v3739_v34  ;;  %v1783_v37 = vpop.f32.mrf.mxu0 }
 0x19f   : > { %v2423_v38 = vpop.f32.mrf.mxu1  ;;  %2656 = vst.msk [vmem:[%s4238_s25 + $0x338] sm:$0xff] %vm2552_vm1, %v1789_v35  ;;  %v1784_v39 = vadd.f32 %v4748_v10, %v1783_v37 }
 0x1a0   : > { %2784 = vst.msk [vmem:[%s4238_s25 + $0x738] sm:$0xff] %vm2552_vm1, %v2429_v36  ;;  %v2424_v40 = vadd.f32 %v4748_v10, %v2423_v38  ;;  %v3550_v41 = vpop.f32.mrf.mxu0 }
 0x1a1   : > { %v3742_v42 = vpop.f32.mrf.mxu1  ;;  %2655 = vst.msk [vmem:[%s4238_s25 + $0x330] sm:$0xff] %vm2552_vm1, %v1784_v39  ;;  %v1799_v43 = vadd.f32 %v4748_v10, %v3550_v41 }
 0x1a2   : > { %2783 = vst.msk [vmem:[%s4238_s25 + $0x730] sm:$0xff] %vm2552_vm1, %v2424_v40  ;;  %v2439_v44 = vadd.f32 %v4748_v10, %v3742_v42  ;;  %v1793_v45 = vpop.f32.mrf.mxu0 }
 0x1a3   : > { %v2433_v46 = vpop.f32.mrf.mxu1  ;;  %2658 = vst.msk [vmem:[%s4238_s25 + $0x348] sm:$0xff] %vm2552_vm1, %v1799_v43  ;;  %v1794_v47 = vadd.f32 %v4748_v10, %v1793_v45 }
 0x1a4   : > { %2786 = vst.msk [vmem:[%s4238_s25 + $0x748] sm:$0xff] %vm2552_vm1, %v2439_v44  ;;  %v2434_v48 = vadd.f32 %v4748_v10, %v2433_v46  ;;  %v3553_v49 = vpop.f32.mrf.mxu0 }
 0x1a5   : > { %v3745_v50 = vpop.f32.mrf.mxu1  ;;  %2657 = vst.msk [vmem:[%s4238_s25 + $0x340] sm:$0xff] %vm2552_vm1, %v1794_v47  ;;  %v1809_v51 = vadd.f32 %v4748_v10, %v3553_v49 }
 0x1a6   : > { %2785 = vst.msk [vmem:[%s4238_s25 + $0x740] sm:$0xff] %vm2552_vm1, %v2434_v48  ;;  %v2449_v52 = vadd.f32 %v4748_v10, %v3745_v50  ;;  %v1803_v53 = vpop.f32.mrf.mxu0 }
 0x1a7   : > { %v2443_v54 = vpop.f32.mrf.mxu1  ;;  %2660 = vst.msk [vmem:[%s4238_s25 + $0x358] sm:$0xff] %vm2552_vm1, %v1809_v51  ;;  %v1804_v55 = vadd.f32 %v4748_v10, %v1803_v53 }
 0x1a8   : > { %2788 = vst.msk [vmem:[%s4238_s25 + $0x758] sm:$0xff] %vm2552_vm1, %v2449_v52  ;;  %v2444_v56 = vadd.f32 %v4748_v10, %v2443_v54  ;;  %v3556_v57 = vpop.f32.mrf.mxu0 }
 0x1a9   : > { %v3748_v58 = vpop.f32.mrf.mxu1  ;;  %2659 = vst.msk [vmem:[%s4238_s25 + $0x350] sm:$0xff] %vm2552_vm1, %v1804_v55  ;;  %v1819_v59 = vadd.f32 %v4748_v10, %v3556_v57 }
 0x1aa   : > { %2787 = vst.msk [vmem:[%s4238_s25 + $0x750] sm:$0xff] %vm2552_vm1, %v2444_v56  ;;  %v2459_v60 = vadd.f32 %v4748_v10, %v3748_v58  ;;  %v1813_v61 = vpop.f32.mrf.mxu0 }
 0x1ab   : > { %v2453_v62 = vpop.f32.mrf.mxu1  ;;  %2662 = vst.msk [vmem:[%s4238_s25 + $0x368] sm:$0xff] %vm2552_vm1, %v1819_v59  ;;  %v1814_v63 = vadd.f32 %v4748_v10, %v1813_v61 }
 0x1ac   : > { %2790 = vst.msk [vmem:[%s4238_s25 + $0x768] sm:$0xff] %vm2552_vm1, %v2459_v60  ;;  %v2454_v0 = vadd.f32 %v4748_v10, %v2453_v62  ;;  %v3559_v1 = vpop.f32.mrf.mxu0 }
 0x1ad   : > { %v3751_v2 = vpop.f32.mrf.mxu1  ;;  %2661 = vst.msk [vmem:[%s4238_s25 + $0x360] sm:$0xff] %vm2552_vm1, %v1814_v63  ;;  %v1829_v3 = vadd.f32 %v4748_v10, %v3559_v1 }
 0x1ae   : > { %2789 = vst.msk [vmem:[%s4238_s25 + $0x760] sm:$0xff] %vm2552_vm1, %v2454_v0  ;;  %v2469_v4 = vadd.f32 %v4748_v10, %v3751_v2  ;;  %v1823_v6 = vpop.f32.mrf.mxu0 }
 0x1af   : > { %v2463_v7 = vpop.f32.mrf.mxu1  ;;  %2664 = vst.msk [vmem:[%s4238_s25 + $0x378] sm:$0xff] %vm2552_vm1, %v1829_v3  ;;  %v1824_v8 = vadd.f32 %v4748_v10, %v1823_v6 }
 0x1b0   : > { %2792 = vst.msk [vmem:[%s4238_s25 + $0x778] sm:$0xff] %vm2552_vm1, %v2469_v4  ;;  %v2464_v9 = vadd.f32 %v4748_v10, %v2463_v7  ;;  %v3562_v11 = vpop.f32.mrf.mxu0 }
 0x1b1   : > { %v3754_v12 = vpop.f32.mrf.mxu1  ;;  %2663 = vst.msk [vmem:[%s4238_s25 + $0x370] sm:$0xff] %vm2552_vm1, %v1824_v8  ;;  %v1839_v13 = vadd.f32 %v4748_v10, %v3562_v11 }
 0x1b2   : > { %2791 = vst.msk [vmem:[%s4238_s25 + $0x770] sm:$0xff] %vm2552_vm1, %v2464_v9  ;;  %v2479_v14 = vadd.f32 %v4748_v10, %v3754_v12  ;;  %v1833_v5 = vpop.f32.mrf.mxu0 }
 0x1b3   : > { %v2473_v15 = vpop.f32.mrf.mxu1  ;;  %2666 = vst.msk [vmem:[%s4238_s25 + $0x388] sm:$0xff] %vm2552_vm1, %v1839_v13  ;;  %v1834_v16 = vadd.f32 %v4748_v10, %v1833_v5 }
 0x1b4   : > { %2794 = vst.msk [vmem:[%s4238_s25 + $0x788] sm:$0xff] %vm2552_vm1, %v2479_v14  ;;  %v2474_v17 = vadd.f32 %v4748_v10, %v2473_v15  ;;  %v3565_v18 = vpop.f32.mrf.mxu0 }
 0x1b5   : > { %v3757_v19 = vpop.f32.mrf.mxu1  ;;  %2665 = vst.msk [vmem:[%s4238_s25 + $0x380] sm:$0xff] %vm2552_vm1, %v1834_v16  ;;  %v1849_v20 = vadd.f32 %v4748_v10, %v3565_v18 }
 0x1b6   : > { %2793 = vst.msk [vmem:[%s4238_s25 + $0x780] sm:$0xff] %vm2552_vm1, %v2474_v17  ;;  %v2489_v21 = vadd.f32 %v4748_v10, %v3757_v19  ;;  %v1843_v22 = vpop.f32.mrf.mxu0 }
 0x1b7   : > { %v2483_v23 = vpop.f32.mrf.mxu1  ;;  %2668 = vst.msk [vmem:[%s4238_s25 + $0x398] sm:$0xff] %vm2552_vm1, %v1849_v20  ;;  %v1844_v24 = vadd.f32 %v4748_v10, %v1843_v22 }
 0x1b8   : > { %2796 = vst.msk [vmem:[%s4238_s25 + $0x798] sm:$0xff] %vm2552_vm1, %v2489_v21  ;;  %v2484_v25 = vadd.f32 %v4748_v10, %v2483_v23  ;;  %v3568_v26 = vpop.f32.mrf.mxu0 }
 0x1b9   : > { %v3760_v27 = vpop.f32.mrf.mxu1  ;;  %2667 = vst.msk [vmem:[%s4238_s25 + $0x390] sm:$0xff] %vm2552_vm1, %v1844_v24  ;;  %v1859_v28 = vadd.f32 %v4748_v10, %v3568_v26 }
 0x1ba   : > { %2795 = vst.msk [vmem:[%s4238_s25 + $0x790] sm:$0xff] %vm2552_vm1, %v2484_v25  ;;  %v2499_v29 = vadd.f32 %v4748_v10, %v3760_v27  ;;  %v1853_v30 = vpop.f32.mrf.mxu0 }
 0x1bb   : > { %v2493_v31 = vpop.f32.mrf.mxu1  ;;  %2670 = vst.msk [vmem:[%s4238_s25 + $0x3a8] sm:$0xff] %vm2552_vm1, %v1859_v28  ;;  %v1854_v32 = vadd.f32 %v4748_v10, %v1853_v30 }
 0x1bc   : > { %2798 = vst.msk [vmem:[%s4238_s25 + $0x7a8] sm:$0xff] %vm2552_vm1, %v2499_v29  ;;  %v2494_v33 = vadd.f32 %v4748_v10, %v2493_v31  ;;  %v3571_v34 = vpop.f32.mrf.mxu0 }
 0x1bd   : > { %v3763_v35 = vpop.f32.mrf.mxu1  ;;  %2669 = vst.msk [vmem:[%s4238_s25 + $0x3a0] sm:$0xff] %vm2552_vm1, %v1854_v32  ;;  %v1869_v36 = vadd.f32 %v4748_v10, %v3571_v34 }
 0x1be   : > { %2797 = vst.msk [vmem:[%s4238_s25 + $0x7a0] sm:$0xff] %vm2552_vm1, %v2494_v33  ;;  %v2509_v37 = vadd.f32 %v4748_v10, %v3763_v35  ;;  %v1863_v38 = vpop.f32.mrf.mxu0 }
 0x1bf   : > { %v2503_v39 = vpop.f32.mrf.mxu1  ;;  %2672 = vst.msk [vmem:[%s4238_s25 + $0x3b8] sm:$0xff] %vm2552_vm1, %v1869_v36  ;;  %v1864_v40 = vadd.f32 %v4748_v10, %v1863_v38 }
 0x1c0   : > { %2800 = vst.msk [vmem:[%s4238_s25 + $0x7b8] sm:$0xff] %vm2552_vm1, %v2509_v37  ;;  %v2504_v41 = vadd.f32 %v4748_v10, %v2503_v39  ;;  %v3574_v42 = vpop.f32.mrf.mxu0 }
 0x1c1   : > { %v3766_v43 = vpop.f32.mrf.mxu1  ;;  %2671 = vst.msk [vmem:[%s4238_s25 + $0x3b0] sm:$0xff] %vm2552_vm1, %v1864_v40  ;;  %v1879_v44 = vadd.f32 %v4748_v10, %v3574_v42 }
 0x1c2   : > { %2799 = vst.msk [vmem:[%s4238_s25 + $0x7b0] sm:$0xff] %vm2552_vm1, %v2504_v41  ;;  %v2519_v45 = vadd.f32 %v4748_v10, %v3766_v43  ;;  %v1873_v46 = vpop.f32.mrf.mxu0 }
 0x1c3   : > { %v2513_v47 = vpop.f32.mrf.mxu1  ;;  %2674 = vst.msk [vmem:[%s4238_s25 + $0x3c8] sm:$0xff] %vm2552_vm1, %v1879_v44  ;;  %v1874_v48 = vadd.f32 %v4748_v10, %v1873_v46 }
 0x1c4   : > { %2802 = vst.msk [vmem:[%s4238_s25 + $0x7c8] sm:$0xff] %vm2552_vm1, %v2519_v45  ;;  %v2514_v49 = vadd.f32 %v4748_v10, %v2513_v47  ;;  %v3577_v50 = vpop.f32.mrf.mxu0 }
 0x1c5   : > { %v3769_v51 = vpop.f32.mrf.mxu1  ;;  %2673 = vst.msk [vmem:[%s4238_s25 + $0x3c0] sm:$0xff] %vm2552_vm1, %v1874_v48  ;;  %v1889_v52 = vadd.f32 %v4748_v10, %v3577_v50 }
 0x1c6   : > { %2801 = vst.msk [vmem:[%s4238_s25 + $0x7c0] sm:$0xff] %vm2552_vm1, %v2514_v49  ;;  %v2529_v53 = vadd.f32 %v4748_v10, %v3769_v51  ;;  %v1883_v54 = vpop.f32.mrf.mxu0 }
 0x1c7   : > { %v2523_v55 = vpop.f32.mrf.mxu1  ;;  %2676 = vst.msk [vmem:[%s4238_s25 + $0x3d8] sm:$0xff] %vm2552_vm1, %v1889_v52  ;;  %v1884_v56 = vadd.f32 %v4748_v10, %v1883_v54 }
 0x1c8   : > { %2804 = vst.msk [vmem:[%s4238_s25 + $0x7d8] sm:$0xff] %vm2552_vm1, %v2529_v53  ;;  %v2524_v57 = vadd.f32 %v4748_v10, %v2523_v55  ;;  %v3580_v58 = vpop.f32.mrf.mxu0 }
 0x1c9   : > { %v3772_v59 = vpop.f32.mrf.mxu1  ;;  %2675 = vst.msk [vmem:[%s4238_s25 + $0x3d0] sm:$0xff] %vm2552_vm1, %v1884_v56  ;;  %v1899_v60 = vadd.f32 %v4748_v10, %v3580_v58 }
 0x1ca   : > { %2803 = vst.msk [vmem:[%s4238_s25 + $0x7d0] sm:$0xff] %vm2552_vm1, %v2524_v57  ;;  %v2539_v61 = vadd.f32 %v4748_v10, %v3772_v59  ;;  %v1893_v62 = vpop.f32.mrf.mxu0 }
 0x1cb   : > { %v2533_v63 = vpop.f32.mrf.mxu1  ;;  %2678 = vst.msk [vmem:[%s4238_s25 + $0x3e8] sm:$0xff] %vm2552_vm1, %v1899_v60  ;;  %v1894_v0 = vadd.f32 %v4748_v10, %v1893_v62 }
 0x1cc   : > { %2806 = vst.msk [vmem:[%s4238_s25 + $0x7e8] sm:$0xff] %vm2552_vm1, %v2539_v61  ;;  %v2534_v1 = vadd.f32 %v4748_v10, %v2533_v63  ;;  %v3583_v2 = vpop.f32.mrf.mxu0 }
 0x1cd   : > { %v3775_v3 = vpop.f32.mrf.mxu1  ;;  %2677 = vst.msk [vmem:[%s4238_s25 + $0x3e0] sm:$0xff] %vm2552_vm1, %v1894_v0  ;;  %v1909_v4 = vadd.f32 %v4748_v10, %v3583_v2 }
 0x1ce   : > { %2805 = vst.msk [vmem:[%s4238_s25 + $0x7e0] sm:$0xff] %vm2552_vm1, %v2534_v1  ;;  %v2549_v6 = vadd.f32 %v4748_v10, %v3775_v3  ;;  %v1903_v7 = vpop.f32.mrf.mxu0 }
 0x1cf   : > { %v2543_v8 = vpop.f32.mrf.mxu1  ;;  %2680 = vst.msk [vmem:[%s4238_s25 + $0x3f8] sm:$0xff] %vm2552_vm1, %v1909_v4  ;;  %v1904_v9 = vadd.f32 %v4748_v10, %v1903_v7 }
 0x1d0   : > { %2808 = vst.msk [vmem:[%s4238_s25 + $0x7f8] sm:$0xff] %vm2552_vm1, %v2549_v6  ;;  %v2544_v11 = vadd.f32 %v4748_v10, %v2543_v8 }
 0x1d1   : > { %2679 = vst.msk [vmem:[%s4238_s25 + $0x3f0] sm:$0xff] %vm2552_vm1, %v1904_v9 }
 0x1d2   : > { %2807 = vst.msk [vmem:[%s4238_s25 + $0x7f0] sm:$0xff] %vm2552_vm1, %v2544_v11 }
 0x1d3 PF: > { %s13_s12 = sadd.s32 1, %s3793_s12  }
 0x1d4   : > { %p10_p4 = scmp.ge.s32.totalorder %s13_s12, 10  }
 0x1d6   :  { %12 = sbr.rel (!%p10_p4) target bundleno = 1 (0x1), region = 62 }

</bundles_post_ra>
